<compile_context>
chip_gen: v5e
topology: v5e:2x2
jax: 0.10.0
libtpu: 0.0.40
codegen_flags: <defaults>
</compile_context>

<pallas_src>
import functools

import jax
import jax.numpy as jnp
from jax.experimental import pallas as pl
from jax.experimental.pallas import tpu as pltpu

LANE = 128

CFG = dict(
    feature_dim=32,
    phi_dim=16,
    embedding_dim=32,
    n_heads=4,
    dropout=0.3,            # eval mode -> dropout is identity
    n_measured_genes=24,
    n_unmeasured_genes=64,
    n_cell_types=8,
    n_ref_cells=100,        # the PyTorch module hard-codes 100 reference cells
)

# TODO(synk): the `use_gene_graph` branch of the reference module is shape
# inconsistent at its own call site (GraphAttentionLayer receives h=[B,1,G]
# but adj=[B,G,G]; torch.matmul([B,G,G],[B,1,G]) raises), so it is disabled
# here (use_gene_graph=False), matching the only runnable config.


# ------------------------------- the kernel ----------------------------------

def _unified_kernel(offsets, dims, slab_ref, feats_ref, dw_ref, out_ref):
    B, P, E, C, Gm, Gu = (dims[k] for k in ('B', 'P', 'E', 'C', 'Gm', 'Gu'))
    R0, R1, R2, OUT_W = (dims[k] for k in ('R0', 'R1', 'R2', 'OUT_W'))

    def g(name):
        off, r, c = offsets[name]
        return slab_ref[off:off + r, 0:c]          # static, sublane-aligned view

    def dot(a, b):
        return jnp.dot(a, b, preferred_element_type=jnp.float32)

    def mlp2(x, prefix):
        # Linear -> ReLU -> (Dropout: identity in eval) -> Linear
        h = jnp.maximum(dot(x, g(prefix + '_w1')) + g(prefix + '_b1'), 0.0)
        return dot(h, g(prefix + '_w2')) + g(prefix + '_b2')

    def layernorm(x, gname, bname, eps=1e-5):
        mu = jnp.mean(x, axis=-1, keepdims=True)
        var = jnp.mean((x - mu) ** 2, axis=-1, keepdims=True)
        return (x - mu) * jax.lax.rsqrt(var + eps) * g(gname) + g(bname)

    feats = feats_ref[...]                          # [R0+R1+R2, F]  spot|sub|nb rows

    # --- fused deep-set phi networks: one dot per layer for all 3 branches ---
    h = jnp.maximum(dot(feats, g('phi_w1')) + g('phi_b1'), 0.0)       # [rows,3P]
    phi = dot(h, g('phi_w2')) + g('phi_b2')                           # [rows,3P]
    spot_phi = phi[0:B, 0:P]                                          # [B,P]

    # --- fused projections for both spatial attentions ---
    q = dot(spot_phi, g('q_w')) + g('q_b')                            # [B,2P]
    kv = dot(phi, g('kv_w')) + g('kv_b')                              # [rows,2P+2E]
    dw = dw_ref[...]                                                  # [B,R1+R2]
    scale = 1.0 / float(P) ** 0.5

    def spatial_attention(qv, k_blk, vproj_blk, dw_blk):
        # Scores as one NT matmul per branch: [B,P] x [R,P]^T -> [B,R]; the
        # block-diagonal distance weights (built EXACTLY in the wrapper) both
        # weight the scores and mask cross-batch / padded key columns (dw==0).
        s = jax.lax.dot_general(qv, k_blk, (((1,), (1,)), ((), ())),
                                preferred_element_type=jnp.float32) * scale
        s = s * dw_blk
        mask = dw_blk > 0.0
        m = jnp.max(jnp.where(mask, s, -1e30), axis=-1, keepdims=True)
        e = jnp.where(mask, jnp.exp(s - m), 0.0)
        attn = e * pl.reciprocal(jnp.sum(e, axis=-1, keepdims=True), approx=True)
        # the value weights have the cell-embedding input_proj folded in at
        # pack time, so this lands directly in E-space.
        return dot(attn, vproj_blk)                                   # [B,E]

    sub_x = spatial_attention(q[:, 0:P],
                              kv[R0:R0 + R1, 0:P],
                              kv[R0:R0 + R1, P:P + E],
                              dw[:, 0:R1])
    nb_x = spatial_attention(q[:, P:2 * P],
                             kv[R0 + R1:R0 + R1 + R2, P + E:2 * P + E],
                             kv[R0 + R1:R0 + R1 + R2, 2 * P + E:2 * P + 2 * E],
                             dw[:, R1:R1 + R2])

    # --- EnhancedCellEmbedding on a length-1 sequence ---
    x = dot(spot_phi, g('spot_proj_w')) + sub_x + nb_x + g('proj_b')  # [B,E]
    # MultiheadAttention with seq_len == 1: softmax over a single key is 1.0,
    # so attn_output == out_proj(v_proj(x)); fused into one matmul at pack time.
    attn_out = dot(x, g('ce_vo_w')) + g('ce_vo_b')
    x = layernorm(x + attn_out, 'ce_ln1_g', 'ce_ln1_b')
    cell_emb = layernorm(x + mlp2(x, 'ce_ffn'), 'ce_ln2_g', 'ce_ln2_b')

    # --- CellTypeEmbedding (probs is a returned output -> exact divide) ---
    logits = mlp2(cell_emb, 'ct')                                     # [B,C]
    ex = jnp.exp(logits - jnp.max(logits, axis=-1, keepdims=True))
    probs = ex / jnp.sum(ex, axis=-1, keepdims=True)
    enhanced = cell_emb + 0.1 * dot(probs, g('ct_emb'))               # [B,E]

    # --- measured gene predictor (gene-graph branch disabled, see TODO) ---
    measured = mlp2(enhanced, 'mg')                                   # [B,Gm]

    # --- unmeasured predictor on cat([enhanced, measured]) (row-block dots) ---
    off, _, c = offsets['ug_w1']
    hu = jnp.maximum(dot(enhanced, slab_ref[off:off + E, 0:c])
                     + dot(measured, slab_ref[off + E:off + E + Gm, 0:c])
                     + g('ug_b1'), 0.0)
    unmeasured = dot(hu, g('ug_w2')) + g('ug_b2')                     # [B,Gu]

    # --- reference-data integration (ref matrix normalized+transposed at pack) ---
    inv_norm = jax.lax.rsqrt(
        jnp.maximum(jnp.sum(measured * measured, axis=1, keepdims=True), 1e-24))
    sim = dot(measured * inv_norm, g('ref_normT'))                    # [B,R]
    # cell_type_probs sums to 1, so (probs[:,None,:]*sim[:,:,None]).sum(2) == sim;
    # the [B,R,C] intermediate and the probs.sum() reduction are dropped.
    w = sim / (jnp.sum(sim, axis=1, keepdims=True) + 1e-8)            # exact divide
    unmeasured = 0.7 * unmeasured + 0.3 * dot(w, g('ref_unmeas'))

    # --- single lane-dense packed output (one store / one output DMA) ---
    pad = OUT_W - (Gm + Gu + 2 * C + E)
    out_ref[...] = jnp.concatenate(
        [measured, unmeasured, logits, probs, enhanced,
         jnp.zeros((B, pad), jnp.float32)], axis=-1)


# ---------------------------- parameter setup --------------------------------

def init_params(key, cfg):
    F = cfg['feature_dim']; P = cfg['phi_dim']; E = cfg['embedding_dim']
    C = cfg['n_cell_types']; Gm = cfg['n_measured_genes']
    Gu = cfg['n_unmeasured_genes']; R = cfg['n_ref_cells']
    keys = iter(jax.random.split(key, 128))

    def rnd(shape, scale=0.05):
        return (scale * jax.random.normal(next(keys), shape)).astype(jnp.float32)

    params = {}

    def mlp(prefix, din, dhid, dout):
        params[prefix + '_w1'] = rnd((din, dhid))
        params[prefix + '_b1'] = rnd((1, dhid))
        params[prefix + '_w2'] = rnd((dhid, dout))
        params[prefix + '_b2'] = rnd((1, dout))

    def attn(prefix, d):
        for nm in ('q', 'k', 'v'):
            params[f'{prefix}_{nm}_w'] = rnd((d, d))
            params[f'{prefix}_{nm}_b'] = rnd((1, d))

    mlp('phi_spot', F, P, P)
    mlp('phi_sub', F, P, P)
    mlp('phi_nb', F, P, P)
    attn('sa_sub', P)
    attn('sa_nb', P)
    params['ce_proj_w'] = rnd((3 * P, E))     # input_proj weight [3P, E]
    params['ce_proj_b'] = rnd((1, E))
    params['ce_attn_v_w'] = rnd((E, E))
    params['ce_attn_v_b'] = rnd((1, E))
    params['ce_attn_o_w'] = rnd((E, E))
    params['ce_attn_o_b'] = rnd((1, E))
    mlp('ce_ffn', E, 4 * E, E)
    params['ce_ln1_g'] = jnp.ones((1, E), jnp.float32)
    params['ce_ln1_b'] = jnp.zeros((1, E), jnp.float32)
    params['ce_ln2_g'] = jnp.ones((1, E), jnp.float32)
    params['ce_ln2_b'] = jnp.zeros((1, E), jnp.float32)
    mlp('ct', E, E, C)
    params['ct_emb'] = rnd((C, E), scale=1.0)
    mlp('mg', E, E, Gm)
    params['ug_w1'] = rnd((E + Gm, E))        # fused first Linear [E+Gm, E]
    params['ug_b1'] = rnd((1, E))
    params['ug_w2'] = rnd((E, Gu))
    params['ug_b2'] = rnd((1, Gu))
    params['ref_meas'] = rnd((R, Gm), scale=1.0)     # torch.randn buffers
    params['ref_unmeas'] = rnd((R, Gu), scale=1.0)
    return params


def pack_params(params, cfg):
    """Fuse and pack every parameter into one [rows, 128] f32 slab.

    Fusions (all exact matmul reassociations / block packings):
      * phi_w1 [F,3P] column-stack of the 3 deep-set first layers,
        phi_w2 [3P,3P] block-diagonal of the 3 second layers;
      * q_w [P,2P] column-stack of both spatial-attention query projections;
      * kv_w [3P, 2P+2E]: per-branch key projection plus value projection with
        the cell-embedding input_proj row-block pre-multiplied in;
      * ce_vo_w [E,E] = attn_v_w @ attn_o_w (seq_len==1 MHA collapse);
      * ref_normT [Gm,R]: L2-normalized, transposed reference expressions.
    Each entry is padded to a multiple of 8 rows so in-kernel views are
    sublane-aligned.
    """
    P = cfg['phi_dim']; E = cfg['embedding_dim']
    f32 = jnp.float32
    p = {}

    p['phi_w1'] = jnp.concatenate(
        [params['phi_spot_w1'], params['phi_sub_w1'], params['phi_nb_w1']], axis=1)
    p['phi_b1'] = jnp.concatenate(
        [params['phi_spot_b1'], params['phi_sub_b1'], params['phi_nb_b1']], axis=1)
    w2 = jnp.zeros((3 * P, 3 * P), f32)
    w2 = w2.at[0:P, 0:P].set(params['phi_spot_w2'])
    w2 = w2.at[P:2 * P, P:2 * P].set(params['phi_sub_w2'])
    w2 = w2.at[2 * P:3 * P, 2 * P:3 * P].set(params['phi_nb_w2'])
    p['phi_w2'] = w2
    p['phi_b2'] = jnp.concatenate(
        [params['phi_spot_b2'], params['phi_sub_b2'], params['phi_nb_b2']], axis=1)

    p['q_w'] = jnp.concatenate([params['sa_sub_q_w'], params['sa_nb_q_w']], axis=1)
    p['q_b'] = jnp.concatenate([params['sa_sub_q_b'], params['sa_nb_q_b']], axis=1)

    Wp = params['ce_proj_w']                         # [3P, E]
    kv_w = jnp.zeros((3 * P, 2 * P + 2 * E), f32)
    kv_w = kv_w.at[P:2 * P, 0:P].set(params['sa_sub_k_w'])
    kv_w = kv_w.at[P:2 * P, P:P + E].set(params['sa_sub_v_w'] @ Wp[P:2 * P])
    kv_w = kv_w.at[2 * P:3 * P, P + E:2 * P + E].set(params['sa_nb_k_w'])
    kv_w = kv_w.at[2 * P:3 * P, 2 * P + E:2 * P + 2 * E].set(
        params['sa_nb_v_w'] @ Wp[2 * P:3 * P])
    p['kv_w'] = kv_w
    p['kv_b'] = jnp.concatenate(
        [params['sa_sub_k_b'], params['sa_sub_v_b'] @ Wp[P:2 * P],
         params['sa_nb_k_b'], params['sa_nb_v_b'] @ Wp[2 * P:3 * P]], axis=1)

    p['spot_proj_w'] = Wp[0:P]
    p['proj_b'] = params['ce_proj_b']
    p['ce_vo_w'] = params['ce_attn_v_w'] @ params['ce_attn_o_w']
    p['ce_vo_b'] = params['ce_attn_v_b'] @ params['ce_attn_o_w'] + params['ce_attn_o_b']

    for n in ('ce_ln1_g', 'ce_ln1_b', 'ce_ln2_g', 'ce_ln2_b',
              'ce_ffn_w1', 'ce_ffn_b1', 'ce_ffn_w2', 'ce_ffn_b2',
              'ct_w1', 'ct_b1', 'ct_w2', 'ct_b2', 'ct_emb',
              'mg_w1', 'mg_b1', 'mg_w2', 'mg_b2',
              'ug_w1', 'ug_b1', 'ug_w2', 'ug_b2', 'ref_unmeas'):
        p[n] = params[n]

    ref = params['ref_meas']
    p['ref_normT'] = (ref / jnp.maximum(
        jnp.sqrt(jnp.sum(ref * ref, axis=1, keepdims=True)), 1e-12)).T

    offsets = {}
    blocks = []
    row = 0
    for name in sorted(p.keys()):
        a = jnp.asarray(p[name], f32)
        r, c = a.shape
        assert c <= LANE, (name, a.shape)
        rp = ((r + 7) // 8) * 8
        blocks.append(jnp.zeros((rp, LANE), f32).at[:r, :c].set(a))
        offsets[name] = (row, r, c)
        row += rp
    slab = jnp.concatenate(blocks, axis=0)
    return slab, offsets


# ------------------------------- wrapper --------------------------------------

def _cost_estimate(cfg, B, slab_elems, feat_rows, dw_cols, out_w):
    F = cfg['feature_dim']; P = cfg['phi_dim']; E = cfg['embedding_dim']
    C = cfg['n_cell_types']; Gm = cfg['n_measured_genes']
    Gu = cfg['n_unmeasured_genes']; R = cfg['n_ref_cells']
    macs = 0
    macs += feat_rows * (F * 3 * P + 3 * P * 3 * P)          # fused phi
    macs += B * P * 2 * P                                    # fused q proj
    macs += feat_rows * 3 * P * (2 * P + 2 * E)              # fused k/v(+proj)
    macs += B * dw_cols * (P + E)                            # scores + values
    macs += B * (P * E + E * E + 2 * 4 * E * E)              # proj, v/out, ffn
    macs += B * (E * E + E * C + C * E)                      # cell-type head
    macs += B * (E * E + E * Gm)                             # measured predictor
    macs += B * ((E + Gm) * E + E * Gu)                      # unmeasured predictor
    macs += B * (Gm * R + R * Gu)                            # reference integration
    transcendentals = B * (dw_cols + C) + 8 * B
    bytes_accessed = 4 * (slab_elems + feat_rows * F + B * dw_cols + B * out_w)
    return pl.CostEstimate(flops=2 * macs, transcendentals=transcendentals,
                           bytes_accessed=bytes_accessed)


def build_forward(offsets, cfg):
    Gm = cfg['n_measured_genes']; Gu = cfg['n_unmeasured_genes']
    C = cfg['n_cell_types']; E = cfg['embedding_dim']; P = cfg['phi_dim']
    OUT_W = 256                                   # lane-dense packed output width

    @jax.jit
    def forward(slab, spot, sub, nb, sub_d, nb_d):
        B, S, F = sub.shape
        _, N, _ = nb.shape
        f32 = jnp.float32
        rup = lambda n: ((n + 7) // 8) * 8
        R0, R1, R2 = rup(B), rup(B * S), rup(B * N)

        # Pack spot / sub-spot / neighbor features into ONE sublane-aligned,
        # row-stacked operand so all three phi networks are a single dot/layer.
        feats = jnp.zeros((R0 + R1 + R2, F), f32)
        feats = feats.at[0:B].set(spot)
        feats = feats.at[R0:R0 + B * S].set(sub.reshape(B * S, F))
        feats = feats.at[R0 + R1:R0 + R1 + B * N].set(nb.reshape(B * N, F))

        # Block-diagonal distance weights 1/(d+1): exact divide done once here
        # (outside the kernel); zeros double as the cross-batch / padding mask.
        def block_dw(d, T, R):
            wt = 1.0 / (d.astype(f32) + 1.0)                      # [B,T]
            col = jnp.arange(R)[None, :]
            row = jnp.arange(B)[:, None]
            in_block = (col >= row * T) & (col < (row + 1) * T)
            t = jnp.clip(col - row * T, 0, T - 1)
            return jnp.where(in_block, jnp.take_along_axis(wt, t, axis=1), 0.0)

        dw = jnp.concatenate([block_dw(sub_d, S, R1),
                              block_dw(nb_d, N, R2)], axis=-1)    # [B, R1+R2]

        dims = dict(B=B, P=P, E=E, C=C, Gm=Gm, Gu=Gu,
                    R0=R0, R1=R1, R2=R2, OUT_W=OUT_W)
        kernel = functools.partial(_unified_kernel, offsets, dims)

        # Everything is tiny: keep all operands fully VMEM-resident (whole-array
        # blocks, no grid) and fuse the entire forward into one invocation.
        # TODO(synk): at production batch sizes add a 1-D "parallel" grid over
        # the stacked row axis (>=512-row tiles on v5e/v6e, sized against 64 MiB
        # VMEM on v7x) with a constant index_map for the parameter slab so both
        # v7x TensorCores run and HBM traffic overlaps compute; at B=2 a grid
        # only adds fixed per-step overhead.
        vmem = pl.BlockSpec(memory_space=pltpu.MemorySpace.VMEM)
        packed = pl.pallas_call(
            kernel,
            out_shape=jax.ShapeDtypeStruct((B, OUT_W), f32),
            in_specs=[vmem, vmem, vmem],
            out_specs=vmem,
            cost_estimate=_cost_estimate(cfg, B, slab.size,
                                         R0 + R1 + R2, R1 + R2, OUT_W),
        )(slab, feats, dw)

        o = 0
        measured = packed[:, o:o + Gm]; o += Gm
        unmeasured = packed[:, o:o + Gu]; o += Gu
        logits = packed[:, o:o + C]; o += C
        probs = packed[:, o:o + C]; o += C
        emb = packed[:, o:o + E]
        return {
            'measured_predictions': measured,
            'unmeasured_predictions': unmeasured,
            'cell_type_logits': logits,
            'cell_type_probs': probs,
            'cell_embedding': emb,
        }

    return forward


# --------------------- pure-JAX reference (unfused, for checking) -------------

def reference_forward(params, cfg, spot, sub, nb, sub_d, nb_d):
    P = cfg['phi_dim']

    def lin(x, w, b):
        return x @ w + b[0]

    def mlp(x, pre):
        h = jax.nn.relu(lin(x, params[pre + '_w1'], params[pre + '_b1']))
        return lin(h, params[pre + '_w2'], params[pre + '_b2'])

    def ln(x, gamma, beta):
        mu = x.mean(-1, keepdims=True)
        var = ((x - mu) ** 2).mean(-1, keepdims=True)
        return (x - mu) / jnp.sqrt(var + 1e-5) * gamma[0] + beta[0]

    spot_phi = mlp(spot, 'phi_spot')
    sub_phi = mlp(sub, 'phi_sub')
    nb_phi = mlp(nb, 'phi_nb')

    def spatial(qv, ctx, dist, pre):
        q = lin(qv, params[pre + '_q_w'], params[pre + '_q_b'])
        k = lin(ctx, params[pre + '_k_w'], params[pre + '_k_b'])
        v = lin(ctx, params[pre + '_v_w'], params[pre + '_v_b'])
        scores = jnp.einsum('bp,btp->bt', q, k) / (P ** 0.5)
        scores = scores * (1.0 / (dist + 1.0))
        a = jax.nn.softmax(scores, axis=-1)
        return jnp.einsum('bt,btp->bp', a, v)

    sub_ctx = spatial(spot_phi, sub_phi, sub_d, 'sa_sub')
    nb_ctx = spatial(spot_phi, nb_phi, nb_d, 'sa_nb')
    comb = jnp.concatenate([spot_phi, sub_ctx, nb_ctx], axis=-1)
    x = lin(comb, params['ce_proj_w'], params['ce_proj_b'])
    attn = lin(lin(x, params['ce_attn_v_w'], params['ce_attn_v_b']),
               params['ce_attn_o_w'], params['ce_attn_o_b'])
    x = ln(x + attn, params['ce_ln1_g'], params['ce_ln1_b'])
    cell_emb = ln(x + mlp(x, 'ce_ffn'), params['ce_ln2_g'], params['ce_ln2_b'])
    logits = mlp(cell_emb, 'ct')
    probs = jax.nn.softmax(logits, axis=-1)
    enhanced = cell_emb + 0.1 * (probs @ params['ct_emb'])
    measured = mlp(enhanced, 'mg')
    comb2 = jnp.concatenate([enhanced, measured], axis=-1)
    h = jax.nn.relu(lin(comb2, params['ug_w1'], params['ug_b1']))
    unmeasured = lin(h, params['ug_w2'], params['ug_b2'])
    ref = params['ref_meas']
    pred_n = measured / jnp.maximum(
        jnp.sqrt(jnp.sum(measured * measured, axis=1, keepdims=True)), 1e-12)
    ref_n = ref / jnp.maximum(
        jnp.sqrt(jnp.sum(ref * ref, axis=1, keepdims=True)), 1e-12)
    sim = pred_n @ ref_n.T
    cw = (probs[:, None, :] * sim[:, :, None]).sum(2)
    cw = cw / (cw.sum(1, keepdims=True) + 1e-8)
    unmeasured = 0.7 * unmeasured + 0.3 * (cw @ params['ref_unmeas'])
    return {
        'measured_predictions': measured,
        'unmeasured_predictions': unmeasured,
        'cell_type_logits': logits,
        'cell_type_probs': probs,
        'cell_embedding': enhanced,
    }


# --------------------------------- main ---------------------------------------

if __name__ == "__main__":
    key = jax.random.PRNGKey(0)
    kp, kx = jax.random.split(key)
    params = init_params(kp, CFG)
    slab, offsets = pack_params(params, CFG)     # pack/fuse once, outside the jit
    forward = build_forward(offsets, CFG)

    B, S, N = 2, 4, 6
    F = CFG['feature_dim']
    ks = jax.random.split(kx, 5)
    spot_features = jax.random.normal(ks[0], (B, F), jnp.float32)
    subspot_features = jax.random.normal(ks[1], (B, S, F), jnp.float32)
    neighbor_features = jax.random.normal(ks[2], (B, N, F), jnp.float32)
    subspot_distances = jax.random.uniform(ks[3], (B, S), jnp.float32, 0.1, 2.0)
    neighbor_distances = jax.random.uniform(ks[4], (B, N), jnp.float32, 0.5, 5.0)

    outs = forward(slab, spot_features, subspot_features, neighbor_features,
                   subspot_distances, neighbor_distances)
    outs = jax.block_until_ready(outs)

    # shape / finiteness / softmax sanity checks + comparison against the
    # unfused pure-JAX reference (tolerance covers the approx attention
    # softmax reciprocal; everything else is exact reassociation).
    refs = reference_forward(params, CFG, spot_features, subspot_features,
                             neighbor_features, subspot_distances,
                             neighbor_distances)
    assert outs['measured_predictions'].shape == (B, CFG['n_measured_genes'])
    assert outs['unmeasured_predictions'].shape == (B, CFG['n_unmeasured_genes'])
    assert outs['cell_type_logits'].shape == (B, CFG['n_cell_types'])
    assert outs['cell_type_probs'].shape == (B, CFG['n_cell_types'])
    assert outs['cell_embedding'].shape == (B, CFG['embedding_dim'])
    assert jnp.allclose(jnp.sum(outs['cell_type_probs'], axis=-1), 1.0, atol=1e-4)
    for name in outs:
        assert bool(jnp.all(jnp.isfinite(outs[name]))), name
        assert bool(jnp.allclose(outs[name], refs[name],
                                 rtol=5e-2, atol=5e-3)), name

    print("KERNEL_OK")
</pallas_src>

<mosaic_0001>
module attributes {stable_mosaic.version = 11 : i64} {
  func.func @_unified_kernel(%arg0: memref<848x128xf32, #tpu.memory_space<vmem>>, %arg1: memref<32x32xf32, #tpu.memory_space<vmem>>, %arg2: memref<2x24xf32, #tpu.memory_space<vmem>>, %arg3: memref<2x256xf32, #tpu.memory_space<vmem>>) attributes {dimension_semantics = [], scalar_prefetch = 0 : i64, scratch_operands = 0 : i64, tpu.core_type = #tpu.core_type<tc>} {
    %c0 = arith.constant 0 : index
    %c0_0 = arith.constant 0 : index
    %0 = vector.load %arg1[%c0, %c0_0] : memref<32x32xf32, #tpu.memory_space<vmem>>, vector<32x32xf32>
    %c488 = arith.constant 488 : index
    %c0_1 = arith.constant 0 : index
    %1 = vector.load %arg0[%c488, %c0_1] : memref<848x128xf32, #tpu.memory_space<vmem>>, vector<32x48xf32>
    %cst = arith.constant dense<0.000000e+00> : vector<32x48xf32>
    %2 = tpu.matmul %0, %1, %cst {dimension_numbers = #tpu.dot_dimension_numbers<[1], [0], [0], [1], [0, 0, 1, 1], [], []>} : vector<32x32xf32>, vector<32x48xf32>, vector<32x48xf32> -> vector<32x48xf32>
    %c472 = arith.constant 472 : index
    %c0_2 = arith.constant 0 : index
    %3 = vector.load %arg0[%c472, %c0_2] : memref<848x128xf32, #tpu.memory_space<vmem>>, vector<1x48xf32>
    %4 = vector.broadcast %3 : vector<1x48xf32> to vector<32x48xf32>
    %5 = arith.addf %2, %4 : vector<32x48xf32>
    %cst_3 = arith.constant 0.000000e+00 : f32
    %6 = vector.broadcast %cst_3 : f32 to vector<32x48xf32>
    %7 = arith.maximumf %5, %6 : vector<32x48xf32>
    %c520 = arith.constant 520 : index
    %c0_4 = arith.constant 0 : index
    %8 = vector.load %arg0[%c520, %c0_4] : memref<848x128xf32, #tpu.memory_space<vmem>>, vector<48x48xf32>
    %cst_5 = arith.constant dense<0.000000e+00> : vector<32x48xf32>
    %9 = tpu.matmul %7, %8, %cst_5 {dimension_numbers = #tpu.dot_dimension_numbers<[1], [0], [0], [1], [0, 0, 1, 1], [], []>} : vector<32x48xf32>, vector<48x48xf32>, vector<32x48xf32> -> vector<32x48xf32>
    %c480 = arith.constant 480 : index
    %c0_6 = arith.constant 0 : index
    %10 = vector.load %arg0[%c480, %c0_6] : memref<848x128xf32, #tpu.memory_space<vmem>>, vector<1x48xf32>
    %11 = vector.broadcast %10 : vector<1x48xf32> to vector<32x48xf32>
    %12 = arith.addf %9, %11 : vector<32x48xf32>
    %13 = vector.extract_strided_slice %12 {offsets = [0, 0], sizes = [2, 16], strides = [1, 1]} : vector<32x48xf32> to vector<2x16xf32>
    %c584 = arith.constant 584 : index
    %c0_7 = arith.constant 0 : index
    %14 = vector.load %arg0[%c584, %c0_7] : memref<848x128xf32, #tpu.memory_space<vmem>>, vector<16x32xf32>
    %cst_8 = arith.constant dense<0.000000e+00> : vector<2x32xf32>
    %15 = tpu.matmul %13, %14, %cst_8 {dimension_numbers = #tpu.dot_dimension_numbers<[1], [0], [0], [1], [0, 0, 1, 1], [], []>} : vector<2x16xf32>, vector<16x32xf32>, vector<2x32xf32> -> vector<2x32xf32>
    %c576 = arith.constant 576 : index
    %c0_9 = arith.constant 0 : index
    %16 = vector.load %arg0[%c576, %c0_9] : memref<848x128xf32, #tpu.memory_space<vmem>>, vector<1x32xf32>
    %17 = vector.broadcast %16 : vector<1x32xf32> to vector<2x32xf32>
    %18 = arith.addf %15, %17 : vector<2x32xf32>
    %c344 = arith.constant 344 : index
    %c0_10 = arith.constant 0 : index
    %19 = vector.load %arg0[%c344, %c0_10] : memref<848x128xf32, #tpu.memory_space<vmem>>, vector<48x96xf32>
    %cst_11 = arith.constant dense<0.000000e+00> : vector<32x96xf32>
    %20 = tpu.matmul %12, %19, %cst_11 {dimension_numbers = #tpu.dot_dimension_numbers<[1], [0], [0], [1], [0, 0, 1, 1], [], []>} : vector<32x48xf32>, vector<48x96xf32>, vector<32x96xf32> -> vector<32x96xf32>
    %c336 = arith.constant 336 : index
    %c0_12 = arith.constant 0 : index
    %21 = vector.load %arg0[%c336, %c0_12] : memref<848x128xf32, #tpu.memory_space<vmem>>, vector<1x96xf32>
    %22 = vector.broadcast %21 : vector<1x96xf32> to vector<32x96xf32>
    %23 = arith.addf %20, %22 : vector<32x96xf32>
    %c0_13 = arith.constant 0 : index
    %c0_14 = arith.constant 0 : index
    %24 = vector.load %arg2[%c0_13, %c0_14] : memref<2x24xf32, #tpu.memory_space<vmem>>, vector<2x24xf32>
    %25 = vector.extract_strided_slice %18 {offsets = [0, 0], sizes = [2, 16], strides = [1, 1]} : vector<2x32xf32> to vector<2x16xf32>
    %26 = vector.extract_strided_slice %23 {offsets = [8, 0], sizes = [8, 16], strides = [1, 1]} : vector<32x96xf32> to vector<8x16xf32>
    %27 = vector.extract_strided_slice %23 {offsets = [8, 16], sizes = [8, 32], strides = [1, 1]} : vector<32x96xf32> to vector<8x32xf32>
    %28 = vector.extract_strided_slice %24 {offsets = [0, 0], sizes = [2, 8], strides = [1, 1]} : vector<2x24xf32> to vector<2x8xf32>
    %cst_15 = arith.constant dense<0.000000e+00> : vector<2x8xf32>
    %29 = tpu.matmul %25, %26, %cst_15 {dimension_numbers = #tpu.dot_dimension_numbers<[1], [1], [0], [0], [0, 0, 1, 0], [], []>} : vector<2x16xf32>, vector<8x16xf32>, vector<2x8xf32> -> vector<2x8xf32>
    %cst_16 = arith.constant 2.500000e-01 : f32
    %30 = vector.broadcast %cst_16 : f32 to vector<2x8xf32>
    %31 = arith.mulf %29, %30 : vector<2x8xf32>
    %32 = arith.mulf %31, %28 : vector<2x8xf32>
    %cst_17 = arith.constant 0.000000e+00 : f32
    %33 = vector.broadcast %cst_17 : f32 to vector<2x8xf32>
    %34 = arith.cmpf ogt, %28, %33 : vector<2x8xf32>
    %cst_18 = arith.constant -1.000000e+30 : f32
    %35 = vector.broadcast %cst_18 : f32 to vector<2x8xf32>
    %36 = arith.select %34, %32, %35 : vector<2x8xi1>, vector<2x8xf32>
    %cst_19 = arith.constant dense<0xFF800000> : vector<2xf32>
    %37 = vector.multi_reduction <maximumf>, %36, %cst_19 [1] : vector<2x8xf32> to vector<2xf32>
    %38 = vector.shape_cast %37 : vector<2xf32> to vector<2x1xf32>
    %39 = vector.broadcast %38 : vector<2x1xf32> to vector<2x8xf32>
    %40 = arith.subf %32, %39 : vector<2x8xf32>
    %41 = math.exp %40 : vector<2x8xf32>
    %cst_20 = arith.constant 0.000000e+00 : f32
    %42 = vector.broadcast %cst_20 : f32 to vector<2x8xf32>
    %43 = arith.select %34, %41, %42 : vector<2x8xi1>, vector<2x8xf32>
    %cst_21 = arith.constant dense<0.000000e+00> : vector<2xf32>
    %44 = vector.multi_reduction <add>, %43, %cst_21 [1] : vector<2x8xf32> to vector<2xf32>
    %45 = vector.shape_cast %44 : vector<2xf32> to vector<2x1xf32>
    %46 = tpu.reciprocal %45 {approx = true} : vector<2x1xf32> -> vector<2x1xf32>
    %47 = vector.broadcast %46 : vector<2x1xf32> to vector<2x8xf32>
    %48 = arith.mulf %43, %47 : vector<2x8xf32>
    %cst_22 = arith.constant dense<0.000000e+00> : vector<2x32xf32>
    %49 = tpu.matmul %48, %27, %cst_22 {dimension_numbers = #tpu.dot_dimension_numbers<[1], [0], [0], [1], [0, 0, 1, 1], [], []>} : vector<2x8xf32>, vector<8x32xf32>, vector<2x32xf32> -> vector<2x32xf32>
    %50 = vector.extract_strided_slice %18 {offsets = [0, 16], sizes = [2, 16], strides = [1, 1]} : vector<2x32xf32> to vector<2x16xf32>
    %51 = vector.extract_strided_slice %23 {offsets = [16, 48], sizes = [16, 16], strides = [1, 1]} : vector<32x96xf32> to vector<16x16xf32>
    %52 = vector.extract_strided_slice %23 {offsets = [16, 64], sizes = [16, 32], strides = [1, 1]} : vector<32x96xf32> to vector<16x32xf32>
    %53 = vector.extract_strided_slice %24 {offsets = [0, 8], sizes = [2, 16], strides = [1, 1]} : vector<2x24xf32> to vector<2x16xf32>
    %cst_23 = arith.constant dense<0.000000e+00> : vector<2x16xf32>
    %54 = tpu.matmul %50, %51, %cst_23 {dimension_numbers = #tpu.dot_dimension_numbers<[1], [1], [0], [0], [0, 0, 1, 0], [], []>} : vector<2x16xf32>, vector<16x16xf32>, vector<2x16xf32> -> vector<2x16xf32>
    %cst_24 = arith.constant 2.500000e-01 : f32
    %55 = vector.broadcast %cst_24 : f32 to vector<2x16xf32>
    %56 = arith.mulf %54, %55 : vector<2x16xf32>
    %57 = arith.mulf %56, %53 : vector<2x16xf32>
    %cst_25 = arith.constant 0.000000e+00 : f32
    %58 = vector.broadcast %cst_25 : f32 to vector<2x16xf32>
    %59 = arith.cmpf ogt, %53, %58 : vector<2x16xf32>
    %cst_26 = arith.constant -1.000000e+30 : f32
    %60 = vector.broadcast %cst_26 : f32 to vector<2x16xf32>
    %61 = arith.select %59, %57, %60 : vector<2x16xi1>, vector<2x16xf32>
    %cst_27 = arith.constant dense<0xFF800000> : vector<2xf32>
    %62 = vector.multi_reduction <maximumf>, %61, %cst_27 [1] : vector<2x16xf32> to vector<2xf32>
    %63 = vector.shape_cast %62 : vector<2xf32> to vector<2x1xf32>
    %64 = vector.broadcast %63 : vector<2x1xf32> to vector<2x16xf32>
    %65 = arith.subf %57, %64 : vector<2x16xf32>
    %66 = math.exp %65 : vector<2x16xf32>
    %cst_28 = arith.constant 0.000000e+00 : f32
    %67 = vector.broadcast %cst_28 : f32 to vector<2x16xf32>
    %68 = arith.select %59, %66, %67 : vector<2x16xi1>, vector<2x16xf32>
    %cst_29 = arith.constant dense<0.000000e+00> : vector<2xf32>
    %69 = vector.multi_reduction <add>, %68, %cst_29 [1] : vector<2x16xf32> to vector<2xf32>
    %70 = vector.shape_cast %69 : vector<2xf32> to vector<2x1xf32>
    %71 = tpu.reciprocal %70 {approx = true} : vector<2x1xf32> -> vector<2x1xf32>
    %72 = vector.broadcast %71 : vector<2x1xf32> to vector<2x16xf32>
    %73 = arith.mulf %68, %72 : vector<2x16xf32>
    %cst_30 = arith.constant dense<0.000000e+00> : vector<2x32xf32>
    %74 = tpu.matmul %73, %52, %cst_30 {dimension_numbers = #tpu.dot_dimension_numbers<[1], [0], [0], [1], [0, 0, 1, 1], [], []>} : vector<2x16xf32>, vector<16x32xf32>, vector<2x32xf32> -> vector<2x32xf32>
    %c728 = arith.constant 728 : index
    %c0_31 = arith.constant 0 : index
    %75 = vector.load %arg0[%c728, %c0_31] : memref<848x128xf32, #tpu.memory_space<vmem>>, vector<16x32xf32>
    %cst_32 = arith.constant dense<0.000000e+00> : vector<2x32xf32>
    %76 = tpu.matmul %13, %75, %cst_32 {dimension_numbers = #tpu.dot_dimension_numbers<[1], [0], [0], [1], [0, 0, 1, 1], [], []>} : vector<2x16xf32>, vector<16x32xf32>, vector<2x32xf32> -> vector<2x32xf32>
    %77 = arith.addf %76, %49 : vector<2x32xf32>
    %78 = arith.addf %77, %74 : vector<2x32xf32>
    %c568 = arith.constant 568 : index
    %c0_33 = arith.constant 0 : index
    %79 = vector.load %arg0[%c568, %c0_33] : memref<848x128xf32, #tpu.memory_space<vmem>>, vector<1x32xf32>
    %80 = vector.broadcast %79 : vector<1x32xf32> to vector<2x32xf32>
    %81 = arith.addf %78, %80 : vector<2x32xf32>
    %c216 = arith.constant 216 : index
    %c0_34 = arith.constant 0 : index
    %82 = vector.load %arg0[%c216, %c0_34] : memref<848x128xf32, #tpu.memory_space<vmem>>, vector<32x32xf32>
    %cst_35 = arith.constant dense<0.000000e+00> : vector<2x32xf32>
    %83 = tpu.matmul %81, %82, %cst_35 {dimension_numbers = #tpu.dot_dimension_numbers<[1], [0], [0], [1], [0, 0, 1, 1], [], []>} : vector<2x32xf32>, vector<32x32xf32>, vector<2x32xf32> -> vector<2x32xf32>
    %c208 = arith.constant 208 : index
    %c0_36 = arith.constant 0 : index
    %84 = vector.load %arg0[%c208, %c0_36] : memref<848x128xf32, #tpu.memory_space<vmem>>, vector<1x32xf32>
    %85 = vector.broadcast %84 : vector<1x32xf32> to vector<2x32xf32>
    %86 = arith.addf %83, %85 : vector<2x32xf32>
    %87 = arith.addf %81, %86 : vector<2x32xf32>
    %cst_37 = arith.constant dense<0.000000e+00> : vector<2xf32>
    %88 = vector.multi_reduction <add>, %87, %cst_37 [1] : vector<2x32xf32> to vector<2xf32>
    %89 = vector.shape_cast %88 : vector<2xf32> to vector<2x1xf32>
    %cst_38 = arith.constant 3.200000e+01 : f32
    %90 = vector.broadcast %cst_38 : f32 to vector<2x1xf32>
    %91 = arith.divf %89, %90 : vector<2x1xf32>
    %92 = vector.broadcast %91 : vector<2x1xf32> to vector<2x32xf32>
    %93 = arith.subf %87, %92 : vector<2x32xf32>
    %94 = arith.mulf %93, %93 : vector<2x32xf32>
    %cst_39 = arith.constant dense<0.000000e+00> : vector<2xf32>
    %95 = vector.multi_reduction <add>, %94, %cst_39 [1] : vector<2x32xf32> to vector<2xf32>
    %96 = vector.shape_cast %95 : vector<2xf32> to vector<2x1xf32>
    %cst_40 = arith.constant 3.200000e+01 : f32
    %97 = vector.broadcast %cst_40 : f32 to vector<2x1xf32>
    %98 = arith.divf %96, %97 : vector<2x1xf32>
    %99 = vector.broadcast %91 : vector<2x1xf32> to vector<2x32xf32>
    %100 = arith.subf %87, %99 : vector<2x32xf32>
    %cst_41 = arith.constant 9.99999974E-6 : f32
    %101 = vector.broadcast %cst_41 : f32 to vector<2x1xf32>
    %102 = arith.addf %98, %101 : vector<2x1xf32>
    %103 = math.rsqrt %102 : vector<2x1xf32>
    %104 = vector.broadcast %103 : vector<2x1xf32> to vector<2x32xf32>
    %105 = arith.mulf %100, %104 : vector<2x32xf32>
    %c184 = arith.constant 184 : index
    %c0_42 = arith.constant 0 : index
    %106 = vector.load %arg0[%c184, %c0_42] : memref<848x128xf32, #tpu.memory_space<vmem>>, vector<1x32xf32>
    %107 = vector.broadcast %106 : vector<1x32xf32> to vector<2x32xf32>
    %108 = arith.mulf %105, %107 : vector<2x32xf32>
    %c176 = arith.constant 176 : index
    %c0_43 = arith.constant 0 : index
    %109 = vector.load %arg0[%c176, %c0_43] : memref<848x128xf32, #tpu.memory_space<vmem>>, vector<1x32xf32>
    %110 = vector.broadcast %109 : vector<1x32xf32> to vector<2x32xf32>
    %111 = arith.addf %108, %110 : vector<2x32xf32>
    %c16 = arith.constant 16 : index
    %c0_44 = arith.constant 0 : index
    %112 = vector.load %arg0[%c16, %c0_44] : memref<848x128xf32, #tpu.memory_space<vmem>>, vector<32x128xf32>
    %cst_45 = arith.constant dense<0.000000e+00> : vector<2x128xf32>
    %113 = tpu.matmul %111, %112, %cst_45 {dimension_numbers = #tpu.dot_dimension_numbers<[1], [0], [0], [1], [0, 0, 1, 1], [], []>} : vector<2x32xf32>, vector<32x128xf32>, vector<2x128xf32> -> vector<2x128xf32>
    %c0_46 = arith.constant 0 : index
    %c0_47 = arith.constant 0 : index
    %114 = vector.load %arg0[%c0_46, %c0_47] : memref<848x128xf32, #tpu.memory_space<vmem>>, vector<1x128xf32>
    %115 = vector.broadcast %114 : vector<1x128xf32> to vector<2x128xf32>
    %116 = arith.addf %113, %115 : vector<2x128xf32>
    %cst_48 = arith.constant 0.000000e+00 : f32
    %117 = vector.broadcast %cst_48 : f32 to vector<2x128xf32>
    %118 = arith.maximumf %116, %117 : vector<2x128xf32>
    %c48 = arith.constant 48 : index
    %c0_49 = arith.constant 0 : index
    %119 = vector.load %arg0[%c48, %c0_49] : memref<848x128xf32, #tpu.memory_space<vmem>>, vector<128x32xf32>
    %cst_50 = arith.constant dense<0.000000e+00> : vector<2x32xf32>
    %120 = tpu.matmul %118, %119, %cst_50 {dimension_numbers = #tpu.dot_dimension_numbers<[1], [0], [0], [1], [0, 0, 1, 1], [], []>} : vector<2x128xf32>, vector<128x32xf32>, vector<2x32xf32> -> vector<2x32xf32>
    %c8 = arith.constant 8 : index
    %c0_51 = arith.constant 0 : index
    %121 = vector.load %arg0[%c8, %c0_51] : memref<848x128xf32, #tpu.memory_space<vmem>>, vector<1x32xf32>
    %122 = vector.broadcast %121 : vector<1x32xf32> to vector<2x32xf32>
    %123 = arith.addf %120, %122 : vector<2x32xf32>
    %124 = arith.addf %111, %123 : vector<2x32xf32>
    %cst_52 = arith.constant dense<0.000000e+00> : vector<2xf32>
    %125 = vector.multi_reduction <add>, %124, %cst_52 [1] : vector<2x32xf32> to vector<2xf32>
    %126 = vector.shape_cast %125 : vector<2xf32> to vector<2x1xf32>
    %cst_53 = arith.constant 3.200000e+01 : f32
    %127 = vector.broadcast %cst_53 : f32 to vector<2x1xf32>
    %128 = arith.divf %126, %127 : vector<2x1xf32>
    %129 = vector.broadcast %128 : vector<2x1xf32> to vector<2x32xf32>
    %130 = arith.subf %124, %129 : vector<2x32xf32>
    %131 = arith.mulf %130, %130 : vector<2x32xf32>
    %cst_54 = arith.constant dense<0.000000e+00> : vector<2xf32>
    %132 = vector.multi_reduction <add>, %131, %cst_54 [1] : vector<2x32xf32> to vector<2xf32>
    %133 = vector.shape_cast %132 : vector<2xf32> to vector<2x1xf32>
    %cst_55 = arith.constant 3.200000e+01 : f32
    %134 = vector.broadcast %cst_55 : f32 to vector<2x1xf32>
    %135 = arith.divf %133, %134 : vector<2x1xf32>
    %136 = vector.broadcast %128 : vector<2x1xf32> to vector<2x32xf32>
    %137 = arith.subf %124, %136 : vector<2x32xf32>
    %cst_56 = arith.constant 9.99999974E-6 : f32
    %138 = vector.broadcast %cst_56 : f32 to vector<2x1xf32>
    %139 = arith.addf %135, %138 : vector<2x1xf32>
    %140 = math.rsqrt %139 : vector<2x1xf32>
    %141 = vector.broadcast %140 : vector<2x1xf32> to vector<2x32xf32>
    %142 = arith.mulf %137, %141 : vector<2x32xf32>
    %c200 = arith.constant 200 : index
    %c0_57 = arith.constant 0 : index
    %143 = vector.load %arg0[%c200, %c0_57] : memref<848x128xf32, #tpu.memory_space<vmem>>, vector<1x32xf32>
    %144 = vector.broadcast %143 : vector<1x32xf32> to vector<2x32xf32>
    %145 = arith.mulf %142, %144 : vector<2x32xf32>
    %c192 = arith.constant 192 : index
    %c0_58 = arith.constant 0 : index
    %146 = vector.load %arg0[%c192, %c0_58] : memref<848x128xf32, #tpu.memory_space<vmem>>, vector<1x32xf32>
    %147 = vector.broadcast %146 : vector<1x32xf32> to vector<2x32xf32>
    %148 = arith.addf %145, %147 : vector<2x32xf32>
    %c272 = arith.constant 272 : index
    %c0_59 = arith.constant 0 : index
    %149 = vector.load %arg0[%c272, %c0_59] : memref<848x128xf32, #tpu.memory_space<vmem>>, vector<32x32xf32>
    %cst_60 = arith.constant dense<0.000000e+00> : vector<2x32xf32>
    %150 = tpu.matmul %148, %149, %cst_60 {dimension_numbers = #tpu.dot_dimension_numbers<[1], [0], [0], [1], [0, 0, 1, 1], [], []>} : vector<2x32xf32>, vector<32x32xf32>, vector<2x32xf32> -> vector<2x32xf32>
    %c248 = arith.constant 248 : index
    %c0_61 = arith.constant 0 : index
    %151 = vector.load %arg0[%c248, %c0_61] : memref<848x128xf32, #tpu.memory_space<vmem>>, vector<1x32xf32>
    %152 = vector.broadcast %151 : vector<1x32xf32> to vector<2x32xf32>
    %153 = arith.addf %150, %152 : vector<2x32xf32>
    %cst_62 = arith.constant 0.000000e+00 : f32
    %154 = vector.broadcast %cst_62 : f32 to vector<2x32xf32>
    %155 = arith.maximumf %153, %154 : vector<2x32xf32>
    %c304 = arith.constant 304 : index
    %c0_63 = arith.constant 0 : index
    %156 = vector.load %arg0[%c304, %c0_63] : memref<848x128xf32, #tpu.memory_space<vmem>>, vector<32x8xf32>
    %cst_64 = arith.constant dense<0.000000e+00> : vector<2x8xf32>
    %157 = tpu.matmul %155, %156, %cst_64 {dimension_numbers = #tpu.dot_dimension_numbers<[1], [0], [0], [1], [0, 0, 1, 1], [], []>} : vector<2x32xf32>, vector<32x8xf32>, vector<2x8xf32> -> vector<2x8xf32>
    %c256 = arith.constant 256 : index
    %c0_65 = arith.constant 0 : index
    %158 = vector.load %arg0[%c256, %c0_65] : memref<848x128xf32, #tpu.memory_space<vmem>>, vector<1x8xf32>
    %159 = vector.broadcast %158 : vector<1x8xf32> to vector<2x8xf32>
    %160 = arith.addf %157, %159 : vector<2x8xf32>
    %cst_66 = arith.constant dense<0xFF800000> : vector<2xf32>
    %161 = vector.multi_reduction <maximumf>, %160, %cst_66 [1] : vector<2x8xf32> to vector<2xf32>
    %162 = vector.shape_cast %161 : vector<2xf32> to vector<2x1xf32>
    %163 = vector.broadcast %162 : vector<2x1xf32> to vector<2x8xf32>
    %164 = arith.subf %160, %163 : vector<2x8xf32>
    %165 = math.exp %164 : vector<2x8xf32>
    %cst_67 = arith.constant dense<0.000000e+00> : vector<2xf32>
    %166 = vector.multi_reduction <add>, %165, %cst_67 [1] : vector<2x8xf32> to vector<2xf32>
    %167 = vector.shape_cast %166 : vector<2xf32> to vector<2x1xf32>
    %168 = vector.broadcast %167 : vector<2x1xf32> to vector<2x8xf32>
    %169 = arith.divf %165, %168 : vector<2x8xf32>
    %c264 = arith.constant 264 : index
    %c0_68 = arith.constant 0 : index
    %170 = vector.load %arg0[%c264, %c0_68] : memref<848x128xf32, #tpu.memory_space<vmem>>, vector<8x32xf32>
    %cst_69 = arith.constant dense<0.000000e+00> : vector<2x32xf32>
    %171 = tpu.matmul %169, %170, %cst_69 {dimension_numbers = #tpu.dot_dimension_numbers<[1], [0], [0], [1], [0, 0, 1, 1], [], []>} : vector<2x8xf32>, vector<8x32xf32>, vector<2x32xf32> -> vector<2x32xf32>
    %cst_70 = arith.constant 1.000000e-01 : f32
    %172 = vector.broadcast %cst_70 : f32 to vector<2x32xf32>
    %173 = arith.mulf %172, %171 : vector<2x32xf32>
    %174 = arith.addf %148, %173 : vector<2x32xf32>
    %c408 = arith.constant 408 : index
    %c0_71 = arith.constant 0 : index
    %175 = vector.load %arg0[%c408, %c0_71] : memref<848x128xf32, #tpu.memory_space<vmem>>, vector<32x32xf32>
    %cst_72 = arith.constant dense<0.000000e+00> : vector<2x32xf32>
    %176 = tpu.matmul %174, %175, %cst_72 {dimension_numbers = #tpu.dot_dimension_numbers<[1], [0], [0], [1], [0, 0, 1, 1], [], []>} : vector<2x32xf32>, vector<32x32xf32>, vector<2x32xf32> -> vector<2x32xf32>
    %c392 = arith.constant 392 : index
    %c0_73 = arith.constant 0 : index
    %177 = vector.load %arg0[%c392, %c0_73] : memref<848x128xf32, #tpu.memory_space<vmem>>, vector<1x32xf32>
    %178 = vector.broadcast %177 : vector<1x32xf32> to vector<2x32xf32>
    %179 = arith.addf %176, %178 : vector<2x32xf32>
    %cst_74 = arith.constant 0.000000e+00 : f32
    %180 = vector.broadcast %cst_74 : f32 to vector<2x32xf32>
    %181 = arith.maximumf %179, %180 : vector<2x32xf32>
    %c440 = arith.constant 440 : index
    %c0_75 = arith.constant 0 : index
    %182 = vector.load %arg0[%c440, %c0_75] : memref<848x128xf32, #tpu.memory_space<vmem>>, vector<32x24xf32>
    %cst_76 = arith.constant dense<0.000000e+00> : vector<2x24xf32>
    %183 = tpu.matmul %181, %182, %cst_76 {dimension_numbers = #tpu.dot_dimension_numbers<[1], [0], [0], [1], [0, 0, 1, 1], [], []>} : vector<2x32xf32>, vector<32x24xf32>, vector<2x24xf32> -> vector<2x24xf32>
    %c400 = arith.constant 400 : index
    %c0_77 = arith.constant 0 : index
    %184 = vector.load %arg0[%c400, %c0_77] : memref<848x128xf32, #tpu.memory_space<vmem>>, vector<1x24xf32>
    %185 = vector.broadcast %184 : vector<1x24xf32> to vector<2x24xf32>
    %186 = arith.addf %183, %185 : vector<2x24xf32>
    %c760 = arith.constant 760 : index
    %c0_78 = arith.constant 0 : index
    %187 = vector.load %arg0[%c760, %c0_78] : memref<848x128xf32, #tpu.memory_space<vmem>>, vector<32x32xf32>
    %cst_79 = arith.constant dense<0.000000e+00> : vector<2x32xf32>
    %188 = tpu.matmul %174, %187, %cst_79 {dimension_numbers = #tpu.dot_dimension_numbers<[1], [0], [0], [1], [0, 0, 1, 1], [], []>} : vector<2x32xf32>, vector<32x32xf32>, vector<2x32xf32> -> vector<2x32xf32>
    %c792 = arith.constant 792 : index
    %c0_80 = arith.constant 0 : index
    %189 = vector.load %arg0[%c792, %c0_80] : memref<848x128xf32, #tpu.memory_space<vmem>>, vector<24x32xf32>
    %cst_81 = arith.constant dense<0.000000e+00> : vector<2x32xf32>
    %190 = tpu.matmul %186, %189, %cst_81 {dimension_numbers = #tpu.dot_dimension_numbers<[1], [0], [0], [1], [0, 0, 1, 1], [], []>} : vector<2x24xf32>, vector<24x32xf32>, vector<2x32xf32> -> vector<2x32xf32>
    %191 = arith.addf %188, %190 : vector<2x32xf32>
    %c744 = arith.constant 744 : index
    %c0_82 = arith.constant 0 : index
    %192 = vector.load %arg0[%c744, %c0_82] : memref<848x128xf32, #tpu.memory_space<vmem>>, vector<1x32xf32>
    %193 = vector.broadcast %192 : vector<1x32xf32> to vector<2x32xf32>
    %194 = arith.addf %191, %193 : vector<2x32xf32>
    %cst_83 = arith.constant 0.000000e+00 : f32
    %195 = vector.broadcast %cst_83 : f32 to vector<2x32xf32>
    %196 = arith.maximumf %194, %195 : vector<2x32xf32>
    %c816 = arith.constant 816 : index
    %c0_84 = arith.constant 0 : index
    %197 = vector.load %arg0[%c816, %c0_84] : memref<848x128xf32, #tpu.memory_space<vmem>>, vector<32x64xf32>
    %cst_85 = arith.constant dense<0.000000e+00> : vector<2x64xf32>
    %198 = tpu.matmul %196, %197, %cst_85 {dimension_numbers = #tpu.dot_dimension_numbers<[1], [0], [0], [1], [0, 0, 1, 1], [], []>} : vector<2x32xf32>, vector<32x64xf32>, vector<2x64xf32> -> vector<2x64xf32>
    %c752 = arith.constant 752 : index
    %c0_86 = arith.constant 0 : index
    %199 = vector.load %arg0[%c752, %c0_86] : memref<848x128xf32, #tpu.memory_space<vmem>>, vector<1x64xf32>
    %200 = vector.broadcast %199 : vector<1x64xf32> to vector<2x64xf32>
    %201 = arith.addf %198, %200 : vector<2x64xf32>
    %202 = arith.mulf %186, %186 : vector<2x24xf32>
    %cst_87 = arith.constant dense<0.000000e+00> : vector<2xf32>
    %203 = vector.multi_reduction <add>, %202, %cst_87 [1] : vector<2x24xf32> to vector<2xf32>
    %204 = vector.shape_cast %203 : vector<2xf32> to vector<2x1xf32>
    %cst_88 = arith.constant 1.000000e-24 : f32
    %205 = vector.broadcast %cst_88 : f32 to vector<2x1xf32>
    %206 = arith.maximumf %204, %205 : vector<2x1xf32>
    %207 = math.rsqrt %206 : vector<2x1xf32>
    %208 = vector.broadcast %207 : vector<2x1xf32> to vector<2x24xf32>
    %209 = arith.mulf %186, %208 : vector<2x24xf32>
    %c600 = arith.constant 600 : index
    %c0_89 = arith.constant 0 : index
    %210 = vector.load %arg0[%c600, %c0_89] : memref<848x128xf32, #tpu.memory_space<vmem>>, vector<24x100xf32>
    %cst_90 = arith.constant dense<0.000000e+00> : vector<2x100xf32>
    %211 = tpu.matmul %209, %210, %cst_90 {dimension_numbers = #tpu.dot_dimension_numbers<[1], [0], [0], [1], [0, 0, 1, 1], [], []>} : vector<2x24xf32>, vector<24x100xf32>, vector<2x100xf32> -> vector<2x100xf32>
    %cst_91 = arith.constant dense<0.000000e+00> : vector<2xf32>
    %212 = vector.multi_reduction <add>, %211, %cst_91 [1] : vector<2x100xf32> to vector<2xf32>
    %213 = vector.shape_cast %212 : vector<2xf32> to vector<2x1xf32>
    %cst_92 = arith.constant 9.99999993E-9 : f32
    %214 = vector.broadcast %cst_92 : f32 to vector<2x1xf32>
    %215 = arith.addf %213, %214 : vector<2x1xf32>
    %216 = vector.broadcast %215 : vector<2x1xf32> to vector<2x100xf32>
    %217 = arith.divf %211, %216 : vector<2x100xf32>
    %cst_93 = arith.constant 0.699999988 : f32
    %218 = vector.broadcast %cst_93 : f32 to vector<2x64xf32>
    %219 = arith.mulf %218, %201 : vector<2x64xf32>
    %c624 = arith.constant 624 : index
    %c0_94 = arith.constant 0 : index
    %220 = vector.load %arg0[%c624, %c0_94] : memref<848x128xf32, #tpu.memory_space<vmem>>, vector<100x64xf32>
    %cst_95 = arith.constant dense<0.000000e+00> : vector<2x64xf32>
    %221 = tpu.matmul %217, %220, %cst_95 {dimension_numbers = #tpu.dot_dimension_numbers<[1], [0], [0], [1], [0, 0, 1, 1], [], []>} : vector<2x100xf32>, vector<100x64xf32>, vector<2x64xf32> -> vector<2x64xf32>
    %cst_96 = arith.constant 3.000000e-01 : f32
    %222 = vector.broadcast %cst_96 : f32 to vector<2x64xf32>
    %223 = arith.mulf %222, %221 : vector<2x64xf32>
    %224 = arith.addf %219, %223 : vector<2x64xf32>
    %cst_97 = arith.constant 0.000000e+00 : f32
    %225 = vector.broadcast %cst_97 : f32 to vector<2x120xf32>
    %226 = tpu.concatenate %186, %224, %160, %169, %174, %225 in 1 : vector<2x24xf32>, vector<2x64xf32>, vector<2x8xf32>, vector<2x8xf32>, vector<2x32xf32>, vector<2x120xf32> -> vector<2x256xf32>
    %c0_98 = arith.constant 0 : index
    %c0_99 = arith.constant 0 : index
    %227 = vector.load %arg3[%c0_98, %c0_99] : memref<2x256xf32, #tpu.memory_space<vmem>>, vector<2x256xf32>
    tpu.vector_store %arg3[%c0_98, %c0_99], %226 {strides = array<i32>} : memref<2x256xf32, #tpu.memory_space<vmem>>, vector<2x256xf32>,
    return
  }
}

</mosaic_0001>

<bundles_post_ra>
// kernel: forward.1
= control target key start
LH: loop header
LB: loop body
LE: loop exit
PB: predicated region body
PF: predicated region fallthrough
CT: control target
= control target key end

     0   :  { %vm24_vm0 = vcmask 261120   ;;  %vm78_vm1 = vcmask 392192   ;;  %vm124_vm2 = vcmask 130048   ;;  %s1034_s13 = smov 112   ;;  %s1035_s14 = smov 80   ;;  %vm226_vm4 = vcmask 58368   ;;  %s1479_s0 = inlined_call_operand.vmem [shape: f32[848,128], index: 0, kind: input, shape index: {}]   ;;  %s1480_s1 = inlined_call_operand.vmem [shape: f32[32,32], index: 1, kind: input, shape index: {}]   ;;  %s1481_s2 = inlined_call_operand.vmem [shape: f32[2,24], index: 2, kind: input, shape index: {}]   ;;  %s1482_s3 = inlined_call_operand.vmem [shape: f32[2,256], index: 3, kind: output, shape index: {}]  }
   0x1   :  { %v21_v0 = vld [vmem:[%s1479_s0 + $0x200] sm:$0xff]  ;;  %v20_v1 = vld [vmem:[%s1479_s0 + $0x1f8] sm:$0xff]  ;;  %v19_v2 = vld [vmem:[%s1479_s0 + $0x1f0] sm:$0xff]  ;;  %vm242_vm5 = vcmask 64512   ;;  %s1037_s17 = smov 8   ;;  %vm311_vm6 = vcmask 189504  }
   0x2   :  { %49 = vmatpush.msra.mxu0 %v21_v0  ;;  %v18_v3 = vld [vmem:[%s1479_s0 + $0x1e8] sm:$0xff]  ;;  %v75_v4 = vld [vmem:[%s1479_s0 + $0x230] sm:$0xff]  ;;  %v14_v6 = vld [vmem:[%s1480_s1] sm:$0xff]  ;;  %s1038_s18 = smov 64   ;;  %vm327_vm7 = vcmask 123904   ;;  %vm420_vm8 = vcmask 254976  }
   0x3   :  { %v74_v5 = vld [vmem:[%s1479_s0 + $0x228] sm:$0xff]  ;;  %101 = vmatpush.msra.mxu1 %v75_v4  ;;  %v73_v7 = vld [vmem:[%s1479_s0 + $0x220] sm:$0xff]  ;;  %v16_v9 = vld [vmem:[%s1480_s1 + $0x10] sm:$0xff]  ;;  %s1040_s6 = smov 104   ;;  %s1041_s16 = smov 88  }
   0x4   :  { %50 = vmatpush.msra.mxu0 %v20_v1  ;;  %v15_v8 = vld [vmem:[%s1480_s1 + $0x8] sm:$0xff]  ;;  %v72_v10 = vld [vmem:[%s1479_s0 + $0x218] sm:$0xff]  ;;  %v71_v11 = vld [vmem:[%s1479_s0 + $0x210] sm:$0xff]  ;;  %s1042_s12 = smov 24  }
   0x5   :  { %102 = vmatpush.msra.mxu1 %v74_v5  ;;  %v70_v12 = vld [vmem:[%s1479_s0 + $0x208] sm:$0xff]  ;;  %v153_v13 = vld [vmem:[%s1479_s0 + $0x180] sm:$0xff]  ;;  %v152_v14 = vld [vmem:[%s1479_s0 + $0x178] sm:$0xff] }
   0x6   :  { %51 = vmatpush.msra.mxu0 %v19_v2  ;;  %v17_v15 = vld [vmem:[%s1480_s1 + $0x18] sm:$0xff]  ;;  %177 = vmatpush.msra.mxu3 %v153_v13  ;;  %v151_v16 = vld [vmem:[%s1479_s0 + $0x170] sm:$0xff]  ;;  %v150_v17 = vld [vmem:[%s1479_s0 + $0x168] sm:$0xff] }
   0x7   :  { %103 = vmatpush.msra.mxu1 %v73_v7  ;;  %v994_v18 = vld [vmem:[%s1479_s0 + $0x1d8] ss:$0 sm:$0xff]  ;;  %v121_v28 = vld [vmem:[%s1479_s0 + $0x250] sm:$0xff]  ;;  %v149_v29 = vld [vmem:[%s1479_s0 + $0x160] sm:$0xff] }
   0x8   :  { %52 = vmatpush.msra.mxu0 %v18_v3  ;;  %178 = vmatpush.msra.mxu3 %v152_v14  ;;  %v365_v30 = vld [vmem:[%s1479_s0 + $0x2e0] sm:$0xff]  ;;  %v120_v31 = vld [vmem:[%s1479_s0 + $0x248] sm:$0xff]  ;;  %v148_v32 = vld [vmem:[%s1479_s0 + $0x158] sm:$0xff] }
   0x9   :  { %945 = vmatmul.msk.f32.vlgmr.msra.gmra.mxu0 %vm24_vm0, %v14_v6  ;;  %104 = vmatpush.msra.mxu1 %v72_v10  ;;  %v364_v33 = vld [vmem:[%s1479_s0 + $0x2d8] sm:$0xff]  ;;  %v995_v37 = vld [vmem:[%s1479_s0 + $0x1e0] ss:$0 sm:$0xff]  ;;  %v997_v45 = vld [vmem:[%s1479_s0 + $0x150] ss:$0 sm:$0xff] }
   0xa   :  { %179 = vmatpush.msra.mxu3 %v151_v16  ;;  %142 = vmatpush.msra.mxu2 %v121_v28  ;;  %v996_v46 = vld [vmem:[%s1479_s0 + $0x240] ss:$0 sm:$0xff] }
   0xb   :  { %105 = vmatpush.msra.mxu1 %v71_v11  ;;  %380 = vmatpush.msrb.mxu0 %v365_v30  ;;  %v195_v56 = vld [vmem:[%s1481_s2] sm:$0x3]  ;;  %s1036_s2 = smov 120  }
   0xc   :  { %180 = vmatpush.msra.mxu3 %v150_v17  ;;  %143 = vmatpush.msra.mxu2 %v120_v31  ;;  %vm224_vm3 = vcmp.gt.f32.partialorder %v195_v56, 0.0 }
   0xd   :  { %106 = vmatpush.msra.mxu1 %v70_v12  ;;  %381 = vmatpush.msrb.mxu0 %v364_v33 }
   0xe   :  { %181 = vmatpush.msra.mxu3 %v149_v29 }
  0x10   :  { %182 = vmatpush.msra.mxu3 %v148_v32 }
  0x11   :  { %946 = vmatmul.msk.f32.gmra.mxu0 %vm24_vm0, %v15_v8 }
  0x19   :  { %947 = vmatmul.msk.f32.gmra.mxu0 %vm24_vm0, %v16_v9 }
  0x21   :  { %948 = vmatmul.msk.f32.gmra.mxu0 %vm24_vm0, %v17_v15 }
  0x86   :  { %v54_v19 = vpop.f32.mrf.mxu0 }
  0x87   :  { %v55_v20 = vadd.f32 %v994_v18, %v54_v19 }
  0x89   :  { %v66_v21 = vmax.f32 %v55_v20, 0.0 }
  0x8b   :  { %949 = vmatmul.msk.f32.vlgmr.msra.gmra.mxu1 %vm78_vm1, %v66_v21 }
  0x8e   :  { %v57_v22 = vpop.f32.mrf.mxu0 }
  0x8f   :  { %v58_v23 = vadd.f32 %v994_v18, %v57_v22 }
  0x91   :  { %v67_v24 = vmax.f32 %v58_v23, 0.0 }
  0x93   :  { %950 = vmatmul.msk.f32.gmra.mxu1 %vm78_vm1, %v67_v24 }
  0x96   :  { %v60_v25 = vpop.f32.mrf.mxu0 }
  0x97   :  { %v61_v26 = vadd.f32 %v994_v18, %v60_v25 }
  0x99   :  { %v68_v27 = vmax.f32 %v61_v26, 0.0 }
  0x9b   :  { %951 = vmatmul.msk.f32.gmra.mxu1 %vm78_vm1, %v68_v27 }
  0x9e   :  { %v63_v34 = vpop.f32.mrf.mxu0 }
  0x9f   :  { %v64_v35 = vadd.f32 %v994_v18, %v63_v34 }
  0xa1   :  { %v69_v36 = vmax.f32 %v64_v35, 0.0  ;;  %v393_v35 = vld [vmem:[%s1479_s0 + $0xf0] sm:$0xff] }
  0xa3   :  { %952 = vmatmul.msk.f32.gmra.mxu1 %vm78_vm1, %v69_v36 }
 0x108   :  { %v108_v38 = vpop.f32.mrf.mxu1 }
 0x109   :  { %v109_v39 = vadd.f32 %v995_v37, %v108_v38  ;;  %v391_v38 = vld [vmem:[%s1479_s0 + $0xe0] sm:$0xff] }
 0x10b   :  { %953 = vmatmul.msk.f32.vlgmr.msra.gmra.mxu2 %vm124_vm2, %v109_v39  ;;  %954 = vmatmul.msk.f32.vlgmr.msra.gmra.mxu3 %vm78_vm1, %v109_v39 }
 0x10c   :  { %965 = vmatmul.msk.f32.vlgmr.msrb.gmra.mxu0 %vm124_vm2, %v109_v39  ;;  %v390_v39 = vld [vmem:[%s1479_s0 + $0xd8] sm:$0xff] }
 0x110   :  { %v111_v40 = vpop.f32.mrf.mxu1 }
 0x111   :  { %v112_v41 = vadd.f32 %v995_v37, %v111_v40 }
 0x113   :  { %955 = vmatmul.msk.f32.gmra.mxu3 %vm78_vm1, %v112_v41 }
 0x118   :  { %v114_v42 = vpop.f32.mrf.mxu1 }
 0x119   :  { %v115_v43 = vadd.f32 %v995_v37, %v114_v42  ;;  %v998_v42 = vld [vmem:[%s1479_s0 + $0x238] ss:$0 sm:$0xff] }
 0x11b   :  { %956 = vmatmul.msk.f32.gmra.mxu3 %vm78_vm1, %v115_v43 }
 0x120   :  { %v117_v53 = vpop.f32.mrf.mxu1 }
 0x121   :  { %v118_v54 = vadd.f32 %v995_v37, %v117_v53  ;;  %v392_v37 = vld [vmem:[%s1479_s0 + $0xe8] sm:$0xff] }
 0x123   :  { %957 = vmatmul.msk.f32.gmra.mxu3 %vm78_vm1, %v118_v54 }
 0x189   :  { %v383_v40 = vpop.f32.mrf.mxu0 }
 0x18e   :  { %v184_v44 = vpop.f32.mrf.mxu3  ;;  %v145_v48 = vpop.f32.mrf.mxu2 }
 0x18f   :  { %v146_v50 = vadd.f32 %v996_v46, %v145_v48  ;;  %v999_v46 = vld [vmem:[%s1479_s0 + $0xd0] ss:$0 sm:$0xff] }
 0x196   :  { %v186_v47 = vpop.f32.mrf.mxu3 }
 0x197   :  { %v187_v49 = vadd.f32 %v997_v45, %v186_v47 }
 0x199   :  { %239 = vrot.lane.b32.xlu1 %v187_v49, %s1034_s13  ;;  %958 = vmatpush.xpose.msk.msrb.mxu2 %vm124_vm2, %v187_v49 }
 0x19c   :  { %959 = vmatmul.msk.f32.vlgmr.msrb.gmra.mxu2 %vm124_vm2, %v146_v50 }
 0x19e   :  { %v189_v51 = vpop.f32.mrf.mxu3 }
 0x19f   :  { %v1163_v52 = vadd.f32 %v997_v45, %v189_v51  ;;  %v1039_v51 = vmov 32.0  }
 0x1a1   :  { %270 = vrot.lane.b32.xlu2 %v1163_v52, %s1035_s14 }
 0x1a6   :  { %v192_v62 = vpop.f32.mrf.mxu3 }
 0x1a7   :  { %v193_v63 = vadd.f32 %v997_v45, %v192_v62 }
 0x1a9   :  { %266 = vrot.lane.b32.xlu2 %v146_v50, %s1034_s13  ;;  %272 = vrot.lane.b32.xlu1 %v193_v63, %s1035_s14  ;;  %v989_v26 = vpack.i.bf16 %v1163_v52, %v193_v63  ;;  %v459_v63 = vld [vmem:[%s1479_s0 + $0x28] sm:$0xff]  ;;  %s1043_s13 = smov 96  }
 0x1fb   :  { %v271_v7 = vpop.permute.xlu2 %270 }
 0x203   :  { %v267_v11 = vpop.permute.xlu2 %266 }
 0x20b   :  { %v240_v55 = vpop.permute.xlu1 %239 }
 0x20c   :  { %261 = vmatpush.msra.mxu2 %v240_v55 }
 0x21b   :  { %v273_v6 = vpop.permute.xlu1 %272 }
 0x21c   :  { %961 = vmatpush.xpose.msk.msrb.mxu2 %vm124_vm2, %v273_v6 }
 0x21f   :  { %v219_v57 = vpop.f32.mrf.mxu2 }
 0x220   :  { %v222_v58 = vmul.f32 0.25, %v219_v57  ;;  %962 = vmatpush.xpose.msk.msrb.mxu2 %vm124_vm2, %v271_v7 }
 0x222   :  { %v223_v59 = vmul.f32 %v222_v58, %v195_v56 }
 0x224   :  { %v225_v60 = vsel %vm224_vm3, %v223_v59, -1e+30 }
 0x225   :  { %v227_v61 = vsel %vm226_vm4, %v225_v60, -inf }
 0x226   :  { %228 = vmax.xlane.f32.xlu0 %v227_v61 }
 0x299   :  { %v229_v0 = vpop.xlane.xlu0 %228 }
 0x29a   :  { %v230_v1 = vsub.f32 %v223_v59, %v229_v0  ;;  %v458_v0 = vld [vmem:[%s1479_s0 + $0x20] sm:$0xff] }
 0x29c   :  { %v231_v2 = vmul.f32 1.442695, %v230_v1  ;;  %v457_v1 = vld [vmem:[%s1479_s0 + $0x18] sm:$0xff] }
 0x29e   :  { %1012 = vpow2.f32 %v231_v2  ;;  %v456_v2 = vld [vmem:[%s1479_s0 + $0x10] sm:$0xff] }
 0x2a4   :  { %v1013_v3 = vpop.eup %1012 }
 0x2a5   :  { %v233_v4 = vsel %vm224_vm3, %v1013_v3, 0.0  ;;  %v501_v3 = vld [vmem:[%s1479_s0 + $0xa8] sm:$0xff] }
 0x2a6   :  { %v234_v5 = vsel %vm226_vm4, %v233_v4, 0.0  ;;  %504 = vmatpush.msrb.mxu3 %v501_v3 }
 0x2a7   :  { %235 = vadd.xlane.f32.xlu0 %v234_v5  ;;  %v499_v5 = vld [vmem:[%s1479_s0 + $0x98] sm:$0xff] }
 0x2bb   :  { %302 = vrot.lane.b32.xlu0 %v195_v56, %s1036_s2 }
 0x31a   :  { %v236_v8 = vpop.xlane.xlu0 %235 }
 0x31b   :  { %1014 = vrcp.f32 %v236_v8  ;;  %v498_v8 = vld [vmem:[%s1479_s0 + $0x90] sm:$0xff] }
 0x321   :  { %v1015_v9 = vpop.eup %1014 }
 0x322   :  { %v238_v10 = vmul.f32 %v1015_v9, %v233_v4  ;;  %v500_v4 = vld [vmem:[%s1479_s0 + $0xa0] sm:$0xff] }
 0x323   :  { %505 = vmatpush.msrb.mxu3 %v500_v4  ;;  %v585_v4 = vld [vmem:[%s1479_s0 + $0x140] sm:$0xff] }
 0x324   :  { %960 = vmatmul.msk.f32.vlgmr.msra.gmra.mxu2 %vm242_vm5, %v238_v10  ;;  %v497_v10 = vld [vmem:[%s1479_s0 + $0x88] sm:$0xff] }
 0x325   :  { %506 = vmatpush.msrb.mxu3 %v499_v5  ;;  %v584_v5 = vld [vmem:[%s1479_s0 + $0x138] sm:$0xff] }
 0x327   :  { %507 = vmatpush.msrb.mxu3 %v498_v8 }
 0x329   :  { %508 = vmatpush.msrb.mxu3 %v497_v10 }
 0x32c   :  { %963 = vmatmul.msk.f32.vlgmr.msrb.gmra.mxu2 %vm124_vm2, %v267_v11  ;;  %v496_v11 = vld [vmem:[%s1479_s0 + $0x80] sm:$0xff] }
 0x32d   :  { %v303_v14 = vpop.permute.xlu0 %302  ;;  %509 = vmatpush.msrb.mxu3 %v496_v11  ;;  %v1007_v11 = vld [vmem:[%s1479_s0 + $0x100] ss:$0 sm:$0xff] }
 0x3a7   :  { %v263_v12 = vpop.f32.mrf.mxu2 }
 0x3a8   :  { %v384_v41 = vadd.f32 %v383_v40, %v263_v12  ;;  %v495_v12 = vld [vmem:[%s1479_s0 + $0x78] sm:$0xff] }
 0x3a9   :  { %510 = vmatpush.msrb.mxu3 %v495_v12 }
 0x3af   :  { %v297_v13 = vpop.f32.mrf.mxu2 }
 0x3b0   :  { %v300_v15 = vmul.f32 0.25, %v297_v13  ;;  %v494_v13 = vld [vmem:[%s1479_s0 + $0x70] sm:$0xff] }
 0x3b1   :  { %511 = vmatpush.msrb.mxu3 %v494_v13 }
 0x3b2   :  { %v305_v16 = vmul.f32 %v303_v14, %v300_v15  ;;  %v493_v15 = vld [vmem:[%s1479_s0 + $0x68] sm:$0xff] }
 0x3b3   :  { %512 = vmatpush.msrb.mxu3 %v493_v15 }
 0x3b4   :  { %307 = vrot.lane.b32.xlu1 %v305_v16, %s1037_s17 }
 0x426   :  { %v308_v17 = vpop.permute.xlu1 %307 }
 0x427   :  { %v310_v18 = vsel %vm224_vm3, %v308_v17, -1e+30  ;;  %v492_v17 = vld [vmem:[%s1479_s0 + $0x60] sm:$0xff] }
 0x428   :  { %v312_v19 = vsel %vm311_vm6, %v310_v18, -inf  ;;  %513 = vmatpush.msrb.mxu3 %v492_v17  ;;  %vm728_vm6 = vcmask 195584  }
 0x429   :  { %313 = vmax.xlane.f32.xlu2 %v312_v19  ;;  %v491_v19 = vld [vmem:[%s1479_s0 + $0x58] sm:$0xff] }
 0x42a   :  { %514 = vmatpush.msrb.mxu3 %v491_v19 }
 0x49c   :  { %v314_v20 = vpop.xlane.xlu2 %313 }
 0x49d   :  { %v315_v21 = vsub.f32 %v305_v16, %v314_v20 }
 0x49f   :  { %v316_v22 = vmul.f32 1.442695, %v315_v21  ;;  %v490_v21 = vld [vmem:[%s1479_s0 + $0x50] sm:$0xff] }
 0x4a0   :  { %515 = vmatpush.msrb.mxu3 %v490_v21  ;;  %v665_v21 = vld [vmem:[%s1479_s0 + $0x1b0] sm:$0xff] }
 0x4a1   :  { %1016 = vpow2.f32 %v316_v22 }
 0x4a7   :  { %v1017_v23 = vpop.eup %1016 }
 0x4a8   :  { %319 = vrot.lane.b32.xlu1 %v1017_v23, %s1037_s17  ;;  %v489_v23 = vld [vmem:[%s1479_s0 + $0x48] sm:$0xff] }
 0x4a9   :  { %516 = vmatpush.msrb.mxu3 %v489_v23 }
 0x51a   :  { %v320_v24 = vpop.permute.xlu1 %319 }
 0x51b   :  { %v322_v25 = vsel %vm224_vm3, %v320_v24, 0.0 }
 0x51c   :  { %324 = vrot.lane.b32.xlu1 %v322_v25, %s1036_s2 }
 0x524   :  { %990 = vrot.lane.b32.xlu1 %v989_v26, %s1038_s18 }
 0x58e   :  { %v325_v27 = vpop.permute.xlu1 %324 }
 0x58f   :  { %v328_v28 = vsel %vm327_vm7, %v325_v27, 0.0  ;;  %vm806_vm7 = vcmask 189440  }
 0x590   :  { %329 = vadd.xlane.f32.xlu0 %v328_v28  ;;  %v1001_v28 = vld [vmem:[%s1479_s0 + $0xb0] ss:$0 sm:$0xff] }
 0x596   :  { %v991_v29 = vpop.permute.xlu1 %990 }
 0x597   :  { %v992_v30 = vunpack.i.l.bf16 %v991_v29  ;;  %v993_v31 = vunpack.i.h.bf16 %v991_v29 }
 0x599   :  { %358 = vmatpush.msra.mxu2 %v992_v30 }
 0x59b   :  { %359 = vmatpush.msra.mxu2 %v993_v31  ;;  %v488_v31 = vld [vmem:[%s1479_s0 + $0x40] sm:$0xff] }
 0x59c   :  { %517 = vmatpush.msrb.mxu3 %v488_v31 }
 0x59d   :  { %411 = vmatpush.msrb.mxu2 %v393_v35 }
 0x59f   :  { %412 = vmatpush.msrb.mxu2 %v392_v37 }
 0x5a1   :  { %413 = vmatpush.msrb.mxu2 %v391_v38  ;;  %v1003_v38 = vld [vmem:[%s1479_s0 + $0x8] ss:$0 sm:$0xff] }
 0x5a3   :  { %414 = vmatpush.msrb.mxu2 %v390_v39 }
 0x603   :  { %v330_v32 = vpop.xlane.xlu0 %329 }
 0x604   :  { %1018 = vrcp.f32 %v330_v32  ;;  %v487_v32 = vld [vmem:[%s1479_s0 + $0x38] sm:$0xff] }
 0x605   :  { %1020 = vrcp.f32 %v1039_v51  ;;  %518 = vmatpush.msrb.mxu3 %v487_v32  ;;  %v553_v51 = vld [vmem:[%s1479_s0 + $0x110] sm:$0xff] }
 0x60a   :  { %v1019_v33 = vpop.eup %1018 }
 0x60b   :  { %v332_v34 = vmul.f32 %v1019_v33, %v322_v25  ;;  %v1021_v52 = vpop.eup %1020  ;;  %v1000_v25 = vld [vmem:[%s1479_s0 + $0xb8] ss:$0 sm:$0xff]  ;;  %v486_v33 = vld [vmem:[%s1479_s0 + $0x30] sm:$0xff] }
 0x60c   :  { %v425_v53 = vmul.f32 32.0, %v1021_v52  ;;  %vm429_vm9 = vweird.f32 %v1021_v52  ;;  %519 = vmatpush.msrb.mxu3 %v486_v33 }
 0x60d   :  { %334 = vrot.lane.b32.xlu1 %v332_v34, %s1036_s2  ;;  %v1002_v34 = vld [vmem:[%s1479_s0] ss:$0 sm:$0xff] }
 0x60e   :  { %v426_v54 = vsub.f32 1.0, %v425_v53 }
 0x610   :  { %v427_v55 = vmul.f32 %v1021_v52, %v426_v54 }
 0x612   :  { %v428_v56 = vadd.f32 %v1021_v52, %v427_v55 }
 0x614   :  { %v1205_v57 = vsel %vm429_vm9, %v1021_v52, %v428_v56  ;;  %v586_v52 = vld [vmem:[%s1479_s0 + $0x148] sm:$0xff] }
 0x615   :  { %604 = vmatpush.msra.mxu3 %v586_v52 }
 0x617   :  { %605 = vmatpush.msra.mxu3 %v585_v4 }
 0x619   :  { %606 = vmatpush.msra.mxu3 %v584_v5  ;;  %v1010_v5 = vld [vmem:[%s1479_s0 + $0x2e8] ss:$0 sm:$0xff] }
 0x67f   :  { %v335_v36 = vpop.permute.xlu1 %334 }
 0x680   :  { %964 = vmatmul.msk.f32.vlgmr.msra.gmra.mxu2 %vm124_vm2, %v335_v36 }
 0x681   :  { %477 = vmatpush.msra.mxu2 %v459_v63  ;;  %v1004_v63 = vld [vmem:[%s1479_s0 + $0xc8] ss:$0 sm:$0xff] }
 0x683   :  { %478 = vmatpush.msra.mxu2 %v458_v0 }
 0x685   :  { %479 = vmatpush.msra.mxu2 %v457_v1 }
 0x687   :  { %480 = vmatpush.msra.mxu2 %v456_v2 }
 0x703   :  { %v361_v43 = vpop.f32.mrf.mxu2 }
 0x704   :  { %v386_v44 = vadd.f32 %v384_v41, %v361_v43 }
 0x706   :  { %v389_v45 = vadd.f32 %v998_v42, %v386_v44 }
 0x708   :  { %966 = vmatmul.msk.f32.vlgmr.msrb.gmra.mxu2 %vm24_vm0, %v389_v45 }
 0x78b   :  { %v416_v47 = vpop.f32.mrf.mxu2 }
 0x78c   :  { %v417_v48 = vadd.f32 %v999_v46, %v416_v47 }
 0x78e   :  { %v419_v49 = vadd.f32 %v417_v48, %v389_v45  ;;  %v556_v48 = vld [vmem:[%s1479_s0 + $0x128] sm:$0xff] }
 0x78f   :  { %574 = vmatpush.msra.mxu0 %v556_v48  ;;  %v727_v48 = vld [vmem:[%s1479_s0 + $0x328] sm:$0xff] }
 0x790   :  { %v421_v50 = vsel %vm420_vm8, %v419_v49, 0.0  ;;  %745 = vmatpush.msrb.mxu1 %v727_v48  ;;  %v1011_v48 = vld [vmem:[%s1479_s0 + $0x2f0] ss:$0 sm:$0xff] }
 0x791   :  { %422 = vadd.xlane.f32.xlu1 %v421_v50  ;;  %v554_v50 = vld [vmem:[%s1479_s0 + $0x118] sm:$0xff] }
 0x804   :  { %v423_v58 = vpop.xlane.xlu1 %422 }
 0x805   :  { %v431_v59 = vmul.f32 %v1205_v57, %v423_v58 }
 0x807   :  { %v432_v60 = vsub.f32 %v419_v49, %v431_v59  ;;  %v555_v49 = vld [vmem:[%s1479_s0 + $0x120] sm:$0xff] }
 0x808   :  { %575 = vmatpush.msra.mxu0 %v555_v49  ;;  %v1008_v49 = vld [vmem:[%s1479_s0 + $0x188] ss:$0 sm:$0xff] }
 0x809   :  { %v433_v61 = vmul.f32 %v432_v60, %v432_v60 }
 0x80a   :  { %576 = vmatpush.msra.mxu0 %v554_v50 }
 0x80b   :  { %v434_v62 = vsel %vm420_vm8, %v433_v61, 0.0 }
 0x80c   :  { %435 = vadd.xlane.f32.xlu2 %v434_v62  ;;  %577 = vmatpush.msra.mxu0 %v553_v51 }
 0x87f   :  { %v436_v6 = vpop.xlane.xlu2 %435 }
 0x880   :  { %v437_v7 = vmul.f32 %v436_v6, %v1205_v57  ;;  %v583_v6 = vld [vmem:[%s1479_s0 + $0x130] sm:$0xff] }
 0x881   :  { %607 = vmatpush.msra.mxu3 %v583_v6 }
 0x882   :  { %v438_v9 = vadd.f32 1e-05, %v437_v7  ;;  %v1006_v7 = vld [vmem:[%s1479_s0 + $0xf8] ss:$0 sm:$0xff] }
 0x884   :  { %1022 = vrsqrt.f32 %v438_v9  ;;  %vm445_vm11 = vweird.f32 %v438_v9 }
 0x88a   :  { %v1023_v14 = vpop.eup %1022 }
 0x88b   :  { %v440_v16 = vmul.f32 %v1023_v14, %v438_v9  ;;  %vm446_vm10 = vweird.f32 %v1023_v14 }
 0x88c   :  { %vm447_vm12 = vmor %vm445_vm11, %vm446_vm10  ;;  %vm886_vm11 = vcmask 1043456  }
 0x88d   :  { %v441_v18 = vmul.f32 %v1023_v14, %v440_v16 }
 0x88f   :  { %v442_v20 = vmul.f32 0.5, %v441_v18 }
 0x891   :  { %v443_v22 = vsub.f32 1.5, %v442_v20  ;;  %v636_v20 = vld [vmem:[%s1479_s0 + $0x108] sm:$0xff] }
 0x892   :  { %655 = vmatpush.msrb.mxu2 %v636_v20  ;;  %v881_v20 = vld [vmem:[%s1479_s0 + $0x2d0] sm:$0xf] }
 0x893   :  { %v444_v24 = vmul.f32 %v1023_v14, %v443_v22  ;;  %v724_v22 = vld [vmem:[%s1479_s0 + $0x310] sm:$0xff] }
 0x895   :  { %v448_v26 = vsel %vm447_vm12, %v1023_v14, %v444_v24 }
 0x896   :  { %v449_v27 = vmul.f32 %v448_v26, %v432_v60 }
 0x898   :  { %v452_v29 = vmul.f32 %v1000_v25, %v449_v27 }
 0x89a   :  { %v455_v30 = vadd.f32 %v1001_v28, %v452_v29 }
 0x89c   :  { %967 = vmatmul.msk.f32.vlgmr.msra.gmra.mxu2 %vm24_vm0, %v455_v30 }
 0x89d   :  { %764 = vmatpush.msra.mxu2 %v724_v22 }
 0x91f   :  { %v482_v35 = vpop.f32.mrf.mxu2 }
 0x920   :  { %v483_v36 = vadd.f32 %v1002_v34, %v482_v35  ;;  %v664_v35 = vld [vmem:[%s1479_s0 + $0x1a8] sm:$0xff] }
 0x922   :  { %v485_v37 = vmax.f32 %v483_v36, 0.0  ;;  %v723_v36 = vld [vmem:[%s1479_s0 + $0x308] sm:$0xff] }
 0x923   :  { %765 = vmatpush.msra.mxu2 %v723_v36 }
 0x924   :  { %520 = vmatmul.f32.vlgmr.msrb.gmra.mxu3 %v485_v37  ;;  %v663_v37 = vld [vmem:[%s1479_s0 + $0x1a0] sm:$0xff] }
 0x925   :  { %683 = vmatpush.msrb.mxu3 %v665_v21  ;;  %v880_v21 = vld [vmem:[%s1479_s0 + $0x2c8] sm:$0xff] }
 0x927   :  { %684 = vmatpush.msrb.mxu3 %v664_v35 }
 0x929   :  { %685 = vmatpush.msrb.mxu3 %v663_v37 }
 0x9a7   :  { %v521_v39 = vpop.f32.mrf.mxu3 }
 0x9a8   :  { %v522_v40 = vadd.f32 %v1003_v38, %v521_v39  ;;  %v722_v38 = vld [vmem:[%s1479_s0 + $0x300] sm:$0xff]  ;;  %v662_v39 = vld [vmem:[%s1479_s0 + $0x198] sm:$0xff] }
 0x9a9   :  { %766 = vmatpush.msra.mxu2 %v722_v38  ;;  %686 = vmatpush.msrb.mxu3 %v662_v39 }
 0x9aa   :  { %v524_v41 = vadd.f32 %v522_v40, %v455_v30  ;;  %v721_v40 = vld [vmem:[%s1479_s0 + $0x2f8] sm:$0xff] }
 0x9ab   :  { %767 = vmatpush.msra.mxu2 %v721_v40 }
 0x9ac   :  { %v525_v42 = vsel %vm420_vm8, %v524_v41, 0.0 }
 0x9ad   :  { %526 = vadd.xlane.f32.xlu2 %v525_v42 }
 0xa20   :  { %v527_v43 = vpop.xlane.xlu2 %526 }
 0xa21   :  { %v528_v44 = vmul.f32 %v527_v43, %v1205_v57 }
 0xa23   :  { %v529_v45 = vsub.f32 %v524_v41, %v528_v44  ;;  %v695_v44 = vld [vmem:[%s1479_s0 + $0x1d0] sm:$0xff] }
 0xa24   :  { %713 = vmatpush.msrb.mxu0 %v695_v44 }
 0xa25   :  { %v530_v46 = vmul.f32 %v529_v45, %v529_v45 }
 0xa27   :  { %v531_v47 = vsel %vm420_vm8, %v530_v46, 0.0  ;;  %v693_v46 = vld [vmem:[%s1479_s0 + $0x1c0] sm:$0xff] }
 0xa28   :  { %532 = vadd.xlane.f32.xlu2 %v531_v47  ;;  %v692_v47 = vld [vmem:[%s1479_s0 + $0x1b8] sm:$0xff] }
 0xa9b   :  { %v533_v53 = vpop.xlane.xlu2 %532 }
 0xa9c   :  { %v534_v54 = vmul.f32 %v533_v53, %v1205_v57  ;;  %v1005_v57 = vld [vmem:[%s1479_s0 + $0xc0] ss:$0 sm:$0xff] }
 0xa9d   :  { %v726_v53 = vld [vmem:[%s1479_s0 + $0x320] sm:$0xff] }
 0xa9e   :  { %v535_v55 = vadd.f32 1e-05, %v534_v54  ;;  %746 = vmatpush.msrb.mxu1 %v726_v53  ;;  %v725_v54 = vld [vmem:[%s1479_s0 + $0x318] sm:$0xff] }
 0xaa0   :  { %1024 = vrsqrt.f32 %v535_v55  ;;  %vm542_vm14 = vweird.f32 %v535_v55  ;;  %747 = vmatpush.msrb.mxu1 %v725_v54 }
 0xaa2   :  { %977 = vmatpush.msk.msra.mxu1 %vm886_vm11, %v881_v20 }
 0xaa4   :  { %894 = vmatpush.msra.mxu1 %v880_v21 }
 0xaa6   :  { %v1025_v56 = vpop.eup %1024 }
 0xaa7   :  { %v537_v58 = vmul.f32 %v1025_v56, %v535_v55  ;;  %vm543_vm13 = vweird.f32 %v1025_v56  ;;  %v1009_v55 = vld [vmem:[%s1479_s0 + $0x190] ss:$0 sm:$0xff] }
 0xaa8   :  { %vm544_vm15 = vmor %vm542_vm14, %vm543_vm13 }
 0xaa9   :  { %v538_v59 = vmul.f32 %v1025_v56, %v537_v58 }
 0xaab   :  { %v539_v60 = vmul.f32 0.5, %v538_v59 }
 0xaad   :  { %v540_v61 = vsub.f32 1.5, %v539_v60 }
 0xaaf   :  { %v541_v62 = vmul.f32 %v1025_v56, %v540_v61  ;;  %v779_v61 = vld [vmem:[%s1479_s0 + $0x348] sm:$0xff] }
 0xab1   :  { %v545_v0 = vsel %vm544_vm15, %v1025_v56, %v541_v62  ;;  %v778_v62 = vld [vmem:[%s1479_s0 + $0x340] sm:$0xff] }
 0xab2   :  { %v546_v1 = vmul.f32 %v545_v0, %v529_v45  ;;  %v694_v45 = vld [vmem:[%s1479_s0 + $0x1c8] sm:$0xff]  ;;  %v776_v0 = vld [vmem:[%s1479_s0 + $0x330] sm:$0xff] }
 0xab3   :  { %714 = vmatpush.msrb.mxu0 %v694_v45 }
 0xab4   :  { %v549_v2 = vmul.f32 %v1004_v63, %v546_v1  ;;  %v777_v63 = vld [vmem:[%s1479_s0 + $0x338] sm:$0xff]  ;;  %v824_v1 = vld [vmem:[%s1479_s0 + $0x268] sm:$0xff] }
 0xab5   :  { %715 = vmatpush.msrb.mxu0 %v693_v46 }
 0xab6   :  { %v1308_v3 = vadd.f32 %v1005_v57, %v549_v2  ;;  %v823_v57 = vld [vmem:[%s1479_s0 + $0x260] sm:$0xff]  ;;  %v822_v2 = vld [vmem:[%s1479_s0 + $0x258] sm:$0xff] }
 0xab7   :  { %716 = vmatpush.msrb.mxu0 %v692_v47 }
 0xab8   :  { %968 = vmatmul.msk.f32.vlgmr.msra.gmra.mxu0 %vm24_vm0, %v1308_v3 }
 0xab9   :  { %841 = vmatpush.msra.mxu0 %v824_v1 }
 0xabb   :  { %842 = vmatpush.msra.mxu0 %v823_v57 }
 0xabd   :  { %843 = vmatpush.msra.mxu0 %v822_v2 }
 0xb35   :  { %v579_v8 = vpop.f32.mrf.mxu0 }
 0xb36   :  { %v580_v9 = vadd.f32 %v1006_v7, %v579_v8 }
 0xb38   :  { %v582_v10 = vmax.f32 %v580_v9, 0.0 }
 0xb3a   :  { %969 = vmatmul.msk.f32.vlgmr.msra.gmra.mxu3 %vm24_vm0, %v582_v10 }
 0xb3b   :  { %797 = vmatpush.msra.mxu3 %v779_v61 }
 0xb3d   :  { %798 = vmatpush.msra.mxu3 %v778_v62 }
 0xb3f   :  { %799 = vmatpush.msra.mxu3 %v777_v63 }
 0xb41   :  { %800 = vmatpush.msra.mxu3 %v776_v0 }
 0xbbd   :  { %v609_v12 = vpop.f32.mrf.mxu3 }
 0xbbe   :  { %v1328_v13 = vadd.f32 %v1007_v11, %v609_v12 }
 0xbc0   :  { %v612_v14 = vsel %vm226_vm4, %v1328_v13, -inf }
 0xbc1   :  { %613 = vmax.xlane.f32.xlu0 %v612_v14 }
 0xc34   :  { %v614_v15 = vpop.xlane.xlu0 %613 }
 0xc35   :  { %v615_v16 = vsub.f32 %v1328_v13, %v614_v15 }
 0xc37   :  { %v616_v17 = vmul.f32 1.442695, %v615_v16 }
 0xc39   :  { %1026 = vpow2.f32 %v616_v17 }
 0xc3f   :  { %v1027_v18 = vpop.eup %1026 }
 0xc40   :  { %v618_v19 = vsel %vm226_vm4, %v1027_v18, 0.0 }
 0xc41   :  { %619 = vadd.xlane.f32.xlu2 %v618_v19 }
 0xcb4   :  { %v620_v23 = vpop.xlane.xlu2 %619 }
 0xcb5   :  { %1028 = vrcp.f32 %v620_v23  ;;  %v632_v27 = vand.u32 2147483648, %v620_v23  ;;  %v630_v29 = vand.u32 2147483647, %v620_v23  ;;  %vm626_vm2 = vweird.f32 %v620_v23 }
 0xcb7   :  { %v633_v31 = vor.u32 1.1754944e-38, %v632_v27  ;;  %vm631_vm4 = vcmp.eq.f32.partialorder %v630_v29, 8.507059e+37  ;;  %v876_v27 = vld [vmem:[%s1479_s0 + $0x2a8] sm:$0xff]  ;;  %v873_v29 = vld [vmem:[%s1479_s0 + $0x290] sm:$0xff] }
 0xcbb   :  { %v1029_v24 = vpop.eup %1028 }
 0xcbc   :  { %v622_v25 = vmul.f32 %v1029_v24, %v620_v23  ;;  %vm627_vm1 = vweird.f32 %v1029_v24 }
 0xcbd   :  { %vm628_vm3 = vmor %vm626_vm2, %vm627_vm1  ;;  %vm882_vm1 = vcmask 818176   ;;  %vm927_vm2 = vcmask 719872  }
 0xcbe   :  { %v623_v26 = vsub.f32 1.0, %v622_v25  ;;  %v878_v25 = vld [vmem:[%s1479_s0 + $0x2b8] sm:$0xff] }
 0xcc0   :  { %v624_v28 = vmul.f32 %v1029_v24, %v623_v26  ;;  %v877_v26 = vld [vmem:[%s1479_s0 + $0x2b0] sm:$0xff] }
 0xcc2   :  { %v625_v30 = vadd.f32 %v1029_v24, %v624_v28  ;;  %v874_v28 = vld [vmem:[%s1479_s0 + $0x298] sm:$0xff] }
 0xcc4   :  { %v629_v32 = vsel %vm628_vm3, %v1029_v24, %v625_v30  ;;  %v879_v24 = vld [vmem:[%s1479_s0 + $0x2c0] sm:$0xff]  ;;  %v872_v30 = vld [vmem:[%s1479_s0 + $0x288] sm:$0xff]  ;;  %vm929_vm3 = vcmask 785408  }
 0xcc5   :  { %v634_v33 = vsel %vm631_vm4, %v633_v31, %v629_v32  ;;  %895 = vmatpush.msra.mxu1 %v879_v24  ;;  %v871_v31 = vld [vmem:[%s1479_s0 + $0x280] sm:$0xff]  ;;  %v870_v32 = vld [vmem:[%s1479_s0 + $0x278] sm:$0xff]  ;;  %vm931_vm4 = vcmask 850944  }
 0xcc6   :  { %v1343_v34 = vmul.f32 %v1027_v18, %v634_v33  ;;  %v869_v33 = vld [vmem:[%s1479_s0 + $0x270] sm:$0xff] }
 0xcc7   :  { %896 = vmatpush.msra.mxu1 %v878_v25 }
 0xcc8   :  { %970 = vmatmul.msk.f32.vlgmr.msrb.gmra.mxu2 %vm242_vm5, %v1343_v34 }
 0xcc9   :  { %897 = vmatpush.msra.mxu1 %v877_v26 }
 0xccb   :  { %898 = vmatpush.msra.mxu1 %v876_v27 }
 0xd4b   :  { %v657_v41 = vpop.f32.mrf.mxu2 }
 0xd4c   :  { %v660_v42 = vmul.f32 0.1, %v657_v41 }
 0xd4e   :  { %v661_v43 = vadd.f32 %v660_v42, %v1308_v3 }
 0xd50   :  { %923 = vrot.lane.b32.xlu1 %v661_v43, %s1040_s6  ;;  %971 = vmatmul.msk.f32.vlgmr.msrb.gmra.mxu3 %vm24_vm0, %v661_v43 }
 0xd51   :  { %974 = vmatmul.msk.f32.vlgmr.msra.gmra.mxu2 %vm24_vm0, %v661_v43 }
 0xdd3   :  { %v688_v50 = vpop.f32.mrf.mxu3 }
 0xdd4   :  { %v689_v51 = vadd.f32 %v1008_v49, %v688_v50  ;;  %v769_v6 = vpop.f32.mrf.mxu2 }
 0xdd6   :  { %v691_v52 = vmax.f32 %v689_v51, 0.0 }
 0xdd8   :  { %972 = vmatmul.msk.f32.vlgmr.msrb.gmra.mxu0 %vm24_vm0, %v691_v52 }
 0xe55   :  { %v718_v56 = vpop.f32.mrf.mxu0 }
 0xe56   :  { %v1396_v58 = vadd.f32 %v1009_v55, %v718_v56  ;;  %v924_v56 = vpop.permute.xlu1 %923 }
 0xe58   :  { %973 = vmatmul.msk.f32.vlgmr.msrb.gmra.mxu1 %vm728_vm6, %v1396_v58  ;;  %v805_v59 = vmul.f32 %v1396_v58, %v1396_v58 }
 0xe5a   :  { %v807_v60 = vsel %vm806_vm7, %v805_v59, 0.0  ;;  %vm937_vm7 = vcmask 1041408  }
 0xe5b   :  { %808 = vadd.xlane.f32.xlu0 %v807_v60  ;;  %v933_v60 = vsel %vm242_vm5, %v924_v56, 0.0 }
 0xe5c   :  { %v936_v0 = vrot.slane %v933_v60, 6 }
 0xece   :  { %v809_v3 = vpop.xlane.xlu0 %808 }
 0xecf   :  { %v810_v4 = vmax.f32 %v809_v3, 1e-24 }
 0xed1   :  { %1030 = vrsqrt.f32 %v810_v4  ;;  %vm817_vm9 = vweird.f32 %v810_v4 }
 0xed5   :  { %v749_v7 = vpop.f32.mrf.mxu1 }
 0xed6   :  { %v770_v8 = vadd.f32 %v769_v6, %v749_v7 }
 0xed7   :  { %v1031_v9 = vpop.eup %1030 }
 0xed8   :  { %v812_v10 = vmul.f32 %v1031_v9, %v810_v4  ;;  %v774_v11 = vadd.f32 %v1010_v5, %v770_v8  ;;  %vm818_vm8 = vweird.f32 %v1031_v9 }
 0xed9   :  { %vm819_vm10 = vmor %vm817_vm9, %vm818_vm8 }
 0xeda   :  { %v813_v12 = vmul.f32 %v1031_v9, %v812_v10  ;;  %v775_v14 = vmax.f32 %v774_v11, 0.0 }
 0xedc   :  { %v814_v15 = vmul.f32 0.5, %v813_v12  ;;  %975 = vmatmul.msk.f32.vlgmr.msra.gmra.mxu3 %vm24_vm0, %v775_v14  ;;  %vm848_vm0 = vcmask 812032  }
 0xede   :  { %v815_v16 = vsub.f32 1.5, %v814_v15 }
 0xee0   :  { %v816_v17 = vmul.f32 %v1031_v9, %v815_v16 }
 0xee2   :  { %v820_v18 = vsel %vm819_vm10, %v1031_v9, %v816_v17 }
 0xee3   :  { %v821_v19 = vmul.f32 %v820_v18, %v1396_v58 }
 0xee5   :  { %976 = vmatmul.msk.f32.vlgmr.msra.gmra.mxu0 %vm728_vm6, %v821_v19 }
 0xf5f   :  { %v802_v49 = vpop.f32.mrf.mxu3 }
 0xf60   :  { %v803_v50 = vadd.f32 %v1011_v48, %v802_v49 }
 0xf62   :  { %v845_v22 = vpop.f32.mrf.mxu0  ;;  %v868_v52 = vmul.f32 0.7, %v803_v50 }
 0xf63   :  { %v849_v23 = vsel %vm848_vm0, %v845_v22, 0.0 }
 0xf64   :  { %850 = vadd.xlane.f32.xlu2 %v849_v23 }
 0xf7c   :  { %917 = vrot.lane.b32.xlu2 %v1328_v13, %s1041_s16  ;;  %v875_v13 = vld [vmem:[%s1479_s0 + $0x2a0] sm:$0xff] }
 0xf7d   :  { %899 = vmatpush.msra.mxu1 %v875_v13 }
 0xf7f   :  { %900 = vmatpush.msra.mxu1 %v874_v28 }
 0xf81   :  { %901 = vmatpush.msra.mxu1 %v873_v29 }
 0xf83   :  { %902 = vmatpush.msra.mxu1 %v872_v30 }
 0xf85   :  { %903 = vmatpush.msra.mxu1 %v871_v31 }
 0xf87   :  { %904 = vmatpush.msra.mxu1 %v870_v32 }
 0xf89   :  { %905 = vmatpush.msra.mxu1 %v869_v33 }
 0xfd7   :  { %v851_v35 = vpop.xlane.xlu2 %850 }
 0xfd8   :  { %v852_v36 = vadd.f32 1e-08, %v851_v35 }
 0xfda   :  { %1032 = vrcp.f32 %v852_v36  ;;  %v864_v40 = vand.u32 2147483648, %v852_v36  ;;  %v862_v42 = vand.u32 2147483647, %v852_v36  ;;  %vm858_vm13 = vweird.f32 %v852_v36 }
 0xfdc   :  { %v865_v44 = vor.u32 1.1754944e-38, %v864_v40  ;;  %vm863_vm15 = vcmp.eq.f32.partialorder %v862_v42, 8.507059e+37 }
 0xfdf   :  { %v918_v61 = vpop.permute.xlu2 %917 }
 0xfe0   :  { %v1033_v37 = vpop.eup %1032 }
 0xfe1   :  { %v854_v38 = vmul.f32 %v1033_v37, %v852_v36  ;;  %vm859_vm12 = vweird.f32 %v1033_v37 }
 0xfe2   :  { %vm860_vm14 = vmor %vm858_vm13, %vm859_vm12 }
 0xfe3   :  { %v855_v39 = vsub.f32 1.0, %v854_v38 }
 0xfe5   :  { %v856_v41 = vmul.f32 %v1033_v37, %v855_v39 }
 0xfe7   :  { %v857_v43 = vadd.f32 %v1033_v37, %v856_v41 }
 0xfe9   :  { %v861_v45 = vsel %vm860_vm14, %v1033_v37, %v857_v43 }
 0xfea   :  { %v866_v46 = vsel %vm863_vm15, %v865_v44, %v861_v45 }
 0xfeb   :  { %v867_v47 = vmul.f32 %v866_v46, %v845_v22 }
 0xfed   :  { %978 = vmatmul.msk.f32.vlgmr.msra.gmra.mxu1 %vm882_vm1, %v867_v47 }
0x106a   :  { %v907_v51 = vpop.f32.mrf.mxu1 }
0x106b   :  { %v910_v53 = vmul.f32 0.3, %v907_v51 }
0x106d   :  { %v911_v54 = vadd.f32 %v910_v53, %v868_v52 }
0x106f   :  { %913 = vrot.lane.b32.xlu0 %v911_v54, %s1042_s12 }
0x1077   :  { %920 = vrot.lane.b32.xlu0 %v1343_v34, %s1043_s13 }
0x10e1   :  { %v914_v55 = vpop.permute.xlu0 %913 }
0x10e2   :  { %v926_v59 = vsel %vm728_vm6, %v1396_v58, %v914_v55 }
0x10e3   :  { %v928_v62 = vsel %vm927_vm2, %v926_v59, %v918_v61 }
0x10e9   :  { %v921_v63 = vpop.permute.xlu0 %920 }
0x10ea   :  { %v930_v1 = vsel %vm929_vm3, %v928_v62, %v921_v63 }
0x10eb   :  { %v932_v57 = vsel %vm931_vm4, %v930_v1, %v924_v56 }
0x10ec   :  { %v938_v2 = vsel %vm937_vm7, %v932_v57, %v936_v0 }
0x10ed   :  { %940 = vst [vmem:[%s1482_s3] sm:$0xf] %v938_v2 }

</bundles_post_ra>
